<compile_context>
chip_gen: v5e
topology: v5e:2x2
jax: 0.10.0
libtpu: 0.0.40
codegen_flags: <defaults>
</compile_context>

<pallas_src>
import functools

import jax
import jax.numpy as jnp
import numpy as np
from jax import lax
from jax.experimental import pallas as pl
from jax.experimental.pallas import tpu as pltpu

EPS = 1e-5
_GATE_CONST = float(1.0 - np.exp(-0.25))   # sigma=1 gating constant


# ---------------------------------------------------------------- kernel ----
def _bn_fold(x, gamma, beta, inv_m):
    """Single-pass train-mode BatchNorm over the lane (M) axis of (C, M)."""
    s = jnp.sum(x, axis=1, keepdims=True)                    # (C, 1)
    ss = jnp.sum(x * x, axis=1, keepdims=True)               # (C, 1)
    mean = s * inv_m
    var = jnp.maximum(ss * inv_m - mean * mean, 0.0)
    scale = gamma * lax.rsqrt(var + EPS)                     # (C, 1)  (EUP rsqrt)
    bias = beta - mean * scale                               # (C, 1)
    return x * scale + bias                                  # 1 mul + 1 add / elem


def _kernel(M, W,                                            # static (partial)
            xpf_ref, masks_ref,                              # input + 8 tap masks
            w12_ref, g12_ref, be12_ref,                      # fused conv1|conv2 + bn1|bn2
            wout_ref, go1_ref, beo1_ref, go2_ref, beo2_ref,  # fused 1x1 convs + bn_out*
            out_ref):                                        # (3, M) lane-dense
    inv_m = jnp.float32(1.0 / M)

    # Build the (9*Cin, M) im2col operand in VMEM from static lane slices of
    # the flat padded input (no 9x HBM expansion). Boundary taps get one
    # pre-combined validity-mask multiply each.
    taps = []
    mi = 0
    for dy in (-1, 0, 1):
        for dx in (-1, 0, 1):
            start = (W + 1) + dy * W + dx                    # python int >= 0
            tb = xpf_ref[:, pl.ds(start, M)]                 # (Cin, M)
            if not (dy == 0 and dx == 0):
                tb = tb * masks_ref[mi:mi + 1, :]
                mi += 1
            taps.append(tb)
    x36 = jnp.concatenate(taps, axis=0)                      # (9*Cin, M)

    # conv1 & conv2 fused: ONE K=9*Cin MXU matmul -> (64, M).
    # Conv biases are omitted: train-mode BN cancels per-channel constants.
    x12 = jnp.dot(w12_ref[...], x36, preferred_element_type=jnp.float32)
    x12 = jnp.maximum(_bn_fold(x12, g12_ref[...], be12_ref[...], inv_m), 0.0)
    # rows 0:32 == relu(bn1(conv1(x))), rows 32:64 == relu(bn2(conv2(x)))

    # conv_out1 & conv_out2 fused: ONE (3, 64) @ (64, M) MXU matmul.
    #   row 0,1 = wo2 @ cat([x1, x2])   (pre-gate)
    #   row 2   = wo1 @ x1              (wo1 zero-padded over x2 channels)
    raw = jnp.dot(wout_ref[...], x12, preferred_element_type=jnp.float32)

    # output1 = bn_out1(conv_out1(x1))
    o1 = _bn_fold(raw[2:3, :], go1_ref[...], beo1_ref[...], inv_m)

    # gating weight (sigma = 1); sigmoid/exp run on the EUP
    wgt = jax.nn.sigmoid(o1) - 0.5
    wgt = jnp.exp(-wgt * wgt) + _GATE_CONST                  # (1, M)

    # conv_out2(cat([x1, x2]) * wgt): the per-pixel gate commutes out of the
    # channel contraction -> apply it to the (2, M) result instead.
    o2 = _bn_fold(raw[0:2, :] * wgt, go2_ref[...], beo2_ref[...], inv_m)

    # output = cat([output2_a, output2_v, output1])  -> (3, M), lane-dense
    out_ref[...] = jnp.concatenate([o2, o1], axis=0)


# --------------------------------------------------------------- wrapper ----
@jax.jit
def output_block2_weight2_forward(x_nchw, params):
    N, cin, H, W = x_nchw.shape
    M = N * H * W
    x = x_nchw.astype(jnp.float32)

    # channels-on-sublane / pixels-on-lane; pad the flat pixel axis by W+1
    # zeros on both sides so every 3x3 tap is a static lane slice in-kernel.
    xf = jnp.transpose(x, (1, 0, 2, 3)).reshape(cin, M)       # (Cin, M)
    pad = W + 1
    xpf = jnp.pad(xf, ((0, 0), (pad, pad)))                   # (Cin, M+2W+2)

    # Pre-combined boundary-validity masks, one row per non-center tap in
    # (dy, dx) row-major order: O(M) glue instead of a 9x im2col expansion.
    idx = jnp.arange(M, dtype=jnp.int32)
    xi = idx % W
    yi = (idx // W) % H
    ones = jnp.ones((M,), jnp.float32)
    mx = {-1: (xi > 0).astype(jnp.float32), 0: ones,
          1: (xi < W - 1).astype(jnp.float32)}
    my = {-1: (yi > 0).astype(jnp.float32), 0: ones,
          1: (yi < H - 1).astype(jnp.float32)}
    mask_rows = []
    for dy in (-1, 0, 1):
        for dx in (-1, 0, 1):
            if dy == 0 and dx == 0:
                continue
            mask_rows.append(my[dy] * mx[dx])
    masks = jnp.stack(mask_rows)                              # (8, M)

    # Parameter repacking into the kernel's fused layouts (pure glue).
    # Conv biases b1/b2/bo1/bo2 are intentionally not passed: each conv feeds
    # a train-mode BatchNorm, which exactly cancels per-channel constants.
    p = params
    col = lambda v: v.reshape(-1, 1).astype(jnp.float32)
    w12 = jnp.concatenate(
        [p['w1'].reshape(32, 9 * cin), p['w2'].reshape(32, 9 * cin)],
        axis=0).astype(jnp.float32)                           # (64, 9*Cin)
    g12 = jnp.concatenate([p['g1'], p['g2']]).reshape(-1, 1).astype(jnp.float32)
    be12 = jnp.concatenate([p['be1'], p['be2']]).reshape(-1, 1).astype(jnp.float32)
    wo1_pad = jnp.concatenate(
        [p['wo1'].astype(jnp.float32), jnp.zeros((1, 32), jnp.float32)], axis=1)
    wout = jnp.concatenate([p['wo2'].astype(jnp.float32), wo1_pad], axis=0)  # (3, 64)

    args = (xpf, masks,
            w12, g12, be12,
            wout, col(p['go1']), col(p['beo1']), col(p['go2']), col(p['beo2']))

    vmem = pl.BlockSpec(memory_space=pltpu.MemorySpace.VMEM)
    out_flat = pl.pallas_call(
        functools.partial(_kernel, M, W),
        out_shape=jax.ShapeDtypeStruct((3, M), jnp.float32),
        in_specs=[vmem] * len(args),
        out_specs=vmem,
        compiler_params=pltpu.CompilerParams(
            vmem_limit_bytes=64 * 1024 * 1024),
    )(*args)

    # (3, M) -> (3, N, H, W) -> NCHW
    return jnp.transpose(out_flat.reshape(3, N, H, W), (1, 0, 2, 3))


# ------------------------------------------------------------ parameters ----
def init_params(key, n_in):
    ks = jax.random.split(key, 16)

    def u(k, shape, fan_in):
        b = 1.0 / float(np.sqrt(fan_in))
        return jax.random.uniform(k, shape, jnp.float32, -b, b)

    p = {}
    # conv1/conv2: 3x3, n_in -> 32, stored as (Cout, 9, Cin), tap t = ky*3+kx
    p['w1'] = u(ks[0], (32, 9, n_in), 9 * n_in)
    p['b1'] = u(ks[1], (32,), 9 * n_in)
    p['w2'] = u(ks[2], (32, 9, n_in), 9 * n_in)
    p['b2'] = u(ks[3], (32,), 9 * n_in)
    # conv_out1: 1x1, 32 -> 1 ; conv_out2: 1x1, 64 -> 2 (stored (Cout, Cin))
    p['wo1'] = u(ks[4], (1, 32), 32)
    p['bo1'] = u(ks[5], (1,), 32)
    p['wo2'] = u(ks[6], (2, 64), 64)
    p['bo2'] = u(ks[7], (2,), 64)
    # BatchNorm affine params (batch statistics computed in-kernel)
    p['g1'] = 1.0 + 0.1 * jax.random.normal(ks[8], (32,), jnp.float32)
    p['be1'] = 0.1 * jax.random.normal(ks[9], (32,), jnp.float32)
    p['g2'] = 1.0 + 0.1 * jax.random.normal(ks[10], (32,), jnp.float32)
    p['be2'] = 0.1 * jax.random.normal(ks[11], (32,), jnp.float32)
    p['go1'] = 1.0 + 0.1 * jax.random.normal(ks[12], (1,), jnp.float32)
    p['beo1'] = 0.1 * jax.random.normal(ks[13], (1,), jnp.float32)
    p['go2'] = 1.0 + 0.1 * jax.random.normal(ks[14], (2,), jnp.float32)
    p['beo2'] = 0.1 * jax.random.normal(ks[15], (2,), jnp.float32)
    return p


# ------------------------------------------------------ pure-JAX reference --
def ref_forward(x_nchw, params):
    """Full-fidelity reference (keeps all conv biases) — validates both the
    kernel math and the train-mode-BN bias-cancellation identity."""
    x = jnp.transpose(x_nchw, (0, 2, 3, 1)).astype(jnp.float32)   # NHWC
    cin = x.shape[-1]
    p = params

    def conv3(xx, w, b):
        # w: (Cout, 9, Cin) with tap t = ky*3+kx  ->  HWIO
        w_hwio = jnp.transpose(w, (1, 2, 0)).reshape(3, 3, cin, -1)
        y = lax.conv_general_dilated(xx, w_hwio, (1, 1), 'SAME',
                                     dimension_numbers=('NHWC', 'HWIO', 'NHWC'))
        return y + b.reshape(1, 1, 1, -1)

    def bn(xx, g, be):
        mean = jnp.mean(xx, axis=(0, 1, 2), keepdims=True)
        var = jnp.mean(jnp.square(xx - mean), axis=(0, 1, 2), keepdims=True)
        return (g.reshape(1, 1, 1, -1) * (xx - mean) / jnp.sqrt(var + EPS)
                + be.reshape(1, 1, 1, -1))

    x1 = jax.nn.relu(bn(conv3(x, p['w1'], p['b1']), p['g1'], p['be1']))
    o1 = bn(jnp.einsum('nhwc,oc->nhwo', x1, p['wo1'])
            + p['bo1'].reshape(1, 1, 1, -1), p['go1'], p['beo1'])
    wgt = jax.nn.sigmoid(o1) - 0.5
    wgt = jnp.exp(-wgt * wgt) + _GATE_CONST
    x2 = jax.nn.relu(bn(conv3(x, p['w2'], p['b2']), p['g2'], p['be2']))
    xc = jnp.concatenate([x1, x2], axis=-1) * wgt
    o2 = bn(jnp.einsum('nhwc,oc->nhwo', xc, p['wo2'])
            + p['bo2'].reshape(1, 1, 1, -1), p['go2'], p['beo2'])
    out = jnp.concatenate([o2, o1], axis=-1)
    return jnp.transpose(out, (0, 3, 1, 2))


# ------------------------------------------------------------------ main ----
if __name__ == "__main__":
    key = jax.random.PRNGKey(0)
    kx, kp = jax.random.split(key)

    n_in, N, H, W = 4, 2, 16, 16
    x = jax.random.normal(kx, (N, n_in, H, W), jnp.float32)
    params = init_params(kp, n_in)

    out = output_block2_weight2_forward(x, params)
    out = jax.block_until_ready(out)
    assert out.shape == (N, 3, H, W)

    ref = ref_forward(x, params)
    np.testing.assert_allclose(np.asarray(out), np.asarray(ref),
                               rtol=2e-3, atol=2e-3)
    print("KERNEL_OK")
</pallas_src>

<mosaic_0001>
module attributes {stable_mosaic.version = 11 : i64} {
  func.func @_kernel(%arg0: memref<4x546xf32, #tpu.memory_space<vmem>>, %arg1: memref<8x512xf32, #tpu.memory_space<vmem>>, %arg2: memref<64x36xf32, #tpu.memory_space<vmem>>, %arg3: memref<64x1xf32, #tpu.memory_space<vmem>>, %arg4: memref<64x1xf32, #tpu.memory_space<vmem>>, %arg5: memref<3x64xf32, #tpu.memory_space<vmem>>, %arg6: memref<1x1xf32, #tpu.memory_space<vmem>>, %arg7: memref<1x1xf32, #tpu.memory_space<vmem>>, %arg8: memref<2x1xf32, #tpu.memory_space<vmem>>, %arg9: memref<2x1xf32, #tpu.memory_space<vmem>>, %arg10: memref<3x512xf32, #tpu.memory_space<vmem>>) attributes {dimension_semantics = [], scalar_prefetch = 0 : i64, scratch_operands = 0 : i64, tpu.core_type = #tpu.core_type<tc>} {
    %c0 = arith.constant 0 : index
    %c0_0 = arith.constant 0 : index
    %0 = vector.load %arg0[%c0, %c0_0] : memref<4x546xf32, #tpu.memory_space<vmem>>, vector<4x512xf32>
    %c0_1 = arith.constant 0 : index
    %c0_2 = arith.constant 0 : index
    %1 = vector.load %arg1[%c0_1, %c0_2] : memref<8x512xf32, #tpu.memory_space<vmem>>, vector<1x512xf32>
    %2 = vector.broadcast %1 : vector<1x512xf32> to vector<4x512xf32>
    %3 = arith.mulf %0, %2 : vector<4x512xf32>
    %c0_3 = arith.constant 0 : index
    %c1 = arith.constant 1 : index
    %4 = vector.load %arg0[%c0_3, %c1] : memref<4x546xf32, #tpu.memory_space<vmem>>, vector<4x512xf32>
    %c1_4 = arith.constant 1 : index
    %c0_5 = arith.constant 0 : index
    %5 = vector.load %arg1[%c1_4, %c0_5] : memref<8x512xf32, #tpu.memory_space<vmem>>, vector<1x512xf32>
    %6 = vector.broadcast %5 : vector<1x512xf32> to vector<4x512xf32>
    %7 = arith.mulf %4, %6 : vector<4x512xf32>
    %c0_6 = arith.constant 0 : index
    %c2 = arith.constant 2 : index
    %8 = vector.load %arg0[%c0_6, %c2] : memref<4x546xf32, #tpu.memory_space<vmem>>, vector<4x512xf32>
    %c2_7 = arith.constant 2 : index
    %c0_8 = arith.constant 0 : index
    %9 = vector.load %arg1[%c2_7, %c0_8] : memref<8x512xf32, #tpu.memory_space<vmem>>, vector<1x512xf32>
    %10 = vector.broadcast %9 : vector<1x512xf32> to vector<4x512xf32>
    %11 = arith.mulf %8, %10 : vector<4x512xf32>
    %c0_9 = arith.constant 0 : index
    %c16 = arith.constant 16 : index
    %12 = vector.load %arg0[%c0_9, %c16] : memref<4x546xf32, #tpu.memory_space<vmem>>, vector<4x512xf32>
    %c3 = arith.constant 3 : index
    %c0_10 = arith.constant 0 : index
    %13 = vector.load %arg1[%c3, %c0_10] : memref<8x512xf32, #tpu.memory_space<vmem>>, vector<1x512xf32>
    %14 = vector.broadcast %13 : vector<1x512xf32> to vector<4x512xf32>
    %15 = arith.mulf %12, %14 : vector<4x512xf32>
    %c0_11 = arith.constant 0 : index
    %c17 = arith.constant 17 : index
    %16 = vector.load %arg0[%c0_11, %c17] : memref<4x546xf32, #tpu.memory_space<vmem>>, vector<4x512xf32>
    %c0_12 = arith.constant 0 : index
    %c18 = arith.constant 18 : index
    %17 = vector.load %arg0[%c0_12, %c18] : memref<4x546xf32, #tpu.memory_space<vmem>>, vector<4x512xf32>
    %c4 = arith.constant 4 : index
    %c0_13 = arith.constant 0 : index
    %18 = vector.load %arg1[%c4, %c0_13] : memref<8x512xf32, #tpu.memory_space<vmem>>, vector<1x512xf32>
    %19 = vector.broadcast %18 : vector<1x512xf32> to vector<4x512xf32>
    %20 = arith.mulf %17, %19 : vector<4x512xf32>
    %c0_14 = arith.constant 0 : index
    %c32 = arith.constant 32 : index
    %21 = vector.load %arg0[%c0_14, %c32] : memref<4x546xf32, #tpu.memory_space<vmem>>, vector<4x512xf32>
    %c5 = arith.constant 5 : index
    %c0_15 = arith.constant 0 : index
    %22 = vector.load %arg1[%c5, %c0_15] : memref<8x512xf32, #tpu.memory_space<vmem>>, vector<1x512xf32>
    %23 = vector.broadcast %22 : vector<1x512xf32> to vector<4x512xf32>
    %24 = arith.mulf %21, %23 : vector<4x512xf32>
    %c0_16 = arith.constant 0 : index
    %c33 = arith.constant 33 : index
    %25 = vector.load %arg0[%c0_16, %c33] : memref<4x546xf32, #tpu.memory_space<vmem>>, vector<4x512xf32>
    %c6 = arith.constant 6 : index
    %c0_17 = arith.constant 0 : index
    %26 = vector.load %arg1[%c6, %c0_17] : memref<8x512xf32, #tpu.memory_space<vmem>>, vector<1x512xf32>
    %27 = vector.broadcast %26 : vector<1x512xf32> to vector<4x512xf32>
    %28 = arith.mulf %25, %27 : vector<4x512xf32>
    %c0_18 = arith.constant 0 : index
    %c34 = arith.constant 34 : index
    %29 = vector.load %arg0[%c0_18, %c34] : memref<4x546xf32, #tpu.memory_space<vmem>>, vector<4x512xf32>
    %c7 = arith.constant 7 : index
    %c0_19 = arith.constant 0 : index
    %30 = vector.load %arg1[%c7, %c0_19] : memref<8x512xf32, #tpu.memory_space<vmem>>, vector<1x512xf32>
    %31 = vector.broadcast %30 : vector<1x512xf32> to vector<4x512xf32>
    %32 = arith.mulf %29, %31 : vector<4x512xf32>
    %33 = tpu.concatenate %3, %7, %11, %15, %16, %20, %24, %28, %32 in 0 : vector<4x512xf32>, vector<4x512xf32>, vector<4x512xf32>, vector<4x512xf32>, vector<4x512xf32>, vector<4x512xf32>, vector<4x512xf32>, vector<4x512xf32>, vector<4x512xf32> -> vector<36x512xf32>
    %c0_20 = arith.constant 0 : index
    %c0_21 = arith.constant 0 : index
    %34 = vector.load %arg2[%c0_20, %c0_21] : memref<64x36xf32, #tpu.memory_space<vmem>>, vector<64x36xf32>
    %cst = arith.constant dense<0.000000e+00> : vector<64x512xf32>
    %35 = tpu.matmul %34, %33, %cst {dimension_numbers = #tpu.dot_dimension_numbers<[1], [0], [0], [1], [0, 0, 1, 1], [], []>} : vector<64x36xf32>, vector<36x512xf32>, vector<64x512xf32> -> vector<64x512xf32>
    %c0_22 = arith.constant 0 : index
    %c0_23 = arith.constant 0 : index
    %36 = vector.load %arg3[%c0_22, %c0_23] : memref<64x1xf32, #tpu.memory_space<vmem>>, vector<64x1xf32>
    %c0_24 = arith.constant 0 : index
    %c0_25 = arith.constant 0 : index
    %37 = vector.load %arg4[%c0_24, %c0_25] : memref<64x1xf32, #tpu.memory_space<vmem>>, vector<64x1xf32>
    %cst_26 = arith.constant dense<0.000000e+00> : vector<64xf32>
    %38 = vector.multi_reduction <add>, %35, %cst_26 [1] : vector<64x512xf32> to vector<64xf32>
    %39 = vector.shape_cast %38 : vector<64xf32> to vector<64x1xf32>
    %40 = arith.mulf %35, %35 : vector<64x512xf32>
    %cst_27 = arith.constant dense<0.000000e+00> : vector<64xf32>
    %41 = vector.multi_reduction <add>, %40, %cst_27 [1] : vector<64x512xf32> to vector<64xf32>
    %42 = vector.shape_cast %41 : vector<64xf32> to vector<64x1xf32>
    %cst_28 = arith.constant 0.001953125 : f32
    %43 = vector.broadcast %cst_28 : f32 to vector<64x1xf32>
    %44 = arith.mulf %39, %43 : vector<64x1xf32>
    %cst_29 = arith.constant 0.001953125 : f32
    %45 = vector.broadcast %cst_29 : f32 to vector<64x1xf32>
    %46 = arith.mulf %42, %45 : vector<64x1xf32>
    %47 = arith.mulf %44, %44 : vector<64x1xf32>
    %48 = arith.subf %46, %47 : vector<64x1xf32>
    %cst_30 = arith.constant 0.000000e+00 : f32
    %49 = vector.broadcast %cst_30 : f32 to vector<64x1xf32>
    %50 = arith.maximumf %48, %49 : vector<64x1xf32>
    %cst_31 = arith.constant 9.99999974E-6 : f32
    %51 = vector.broadcast %cst_31 : f32 to vector<64x1xf32>
    %52 = arith.addf %50, %51 : vector<64x1xf32>
    %53 = math.rsqrt %52 : vector<64x1xf32>
    %54 = arith.mulf %36, %53 : vector<64x1xf32>
    %55 = arith.mulf %44, %54 : vector<64x1xf32>
    %56 = arith.subf %37, %55 : vector<64x1xf32>
    %57 = vector.broadcast %54 : vector<64x1xf32> to vector<64x512xf32>
    %58 = arith.mulf %35, %57 : vector<64x512xf32>
    %59 = vector.broadcast %56 : vector<64x1xf32> to vector<64x512xf32>
    %60 = arith.addf %58, %59 : vector<64x512xf32>
    %cst_32 = arith.constant 0.000000e+00 : f32
    %61 = vector.broadcast %cst_32 : f32 to vector<64x512xf32>
    %62 = arith.maximumf %60, %61 : vector<64x512xf32>
    %c0_33 = arith.constant 0 : index
    %c0_34 = arith.constant 0 : index
    %63 = vector.load %arg5[%c0_33, %c0_34] : memref<3x64xf32, #tpu.memory_space<vmem>>, vector<3x64xf32>
    %cst_35 = arith.constant dense<0.000000e+00> : vector<3x512xf32>
    %64 = tpu.matmul %63, %62, %cst_35 {dimension_numbers = #tpu.dot_dimension_numbers<[1], [0], [0], [1], [0, 0, 1, 1], [], []>} : vector<3x64xf32>, vector<64x512xf32>, vector<3x512xf32> -> vector<3x512xf32>
    %65 = vector.extract_strided_slice %64 {offsets = [2, 0], sizes = [1, 512], strides = [1, 1]} : vector<3x512xf32> to vector<1x512xf32>
    %c0_36 = arith.constant 0 : index
    %c0_37 = arith.constant 0 : index
    %66 = vector.load %arg6[%c0_36, %c0_37] : memref<1x1xf32, #tpu.memory_space<vmem>>, vector<1x1xf32>
    %c0_38 = arith.constant 0 : index
    %c0_39 = arith.constant 0 : index
    %67 = vector.load %arg7[%c0_38, %c0_39] : memref<1x1xf32, #tpu.memory_space<vmem>>, vector<1x1xf32>
    %cst_40 = arith.constant dense<0.000000e+00> : vector<1xf32>
    %68 = vector.multi_reduction <add>, %65, %cst_40 [1] : vector<1x512xf32> to vector<1xf32>
    %69 = vector.shape_cast %68 : vector<1xf32> to vector<1x1xf32>
    %70 = arith.mulf %65, %65 : vector<1x512xf32>
    %cst_41 = arith.constant dense<0.000000e+00> : vector<1xf32>
    %71 = vector.multi_reduction <add>, %70, %cst_41 [1] : vector<1x512xf32> to vector<1xf32>
    %72 = vector.shape_cast %71 : vector<1xf32> to vector<1x1xf32>
    %cst_42 = arith.constant 0.001953125 : f32
    %73 = vector.broadcast %cst_42 : f32 to vector<1x1xf32>
    %74 = arith.mulf %69, %73 : vector<1x1xf32>
    %cst_43 = arith.constant 0.001953125 : f32
    %75 = vector.broadcast %cst_43 : f32 to vector<1x1xf32>
    %76 = arith.mulf %72, %75 : vector<1x1xf32>
    %77 = arith.mulf %74, %74 : vector<1x1xf32>
    %78 = arith.subf %76, %77 : vector<1x1xf32>
    %cst_44 = arith.constant 0.000000e+00 : f32
    %79 = vector.broadcast %cst_44 : f32 to vector<1x1xf32>
    %80 = arith.maximumf %78, %79 : vector<1x1xf32>
    %cst_45 = arith.constant 9.99999974E-6 : f32
    %81 = vector.broadcast %cst_45 : f32 to vector<1x1xf32>
    %82 = arith.addf %80, %81 : vector<1x1xf32>
    %83 = math.rsqrt %82 : vector<1x1xf32>
    %84 = arith.mulf %66, %83 : vector<1x1xf32>
    %85 = arith.mulf %74, %84 : vector<1x1xf32>
    %86 = arith.subf %67, %85 : vector<1x1xf32>
    %87 = vector.broadcast %84 : vector<1x1xf32> to vector<1x512xf32>
    %88 = arith.mulf %65, %87 : vector<1x512xf32>
    %89 = vector.broadcast %86 : vector<1x1xf32> to vector<1x512xf32>
    %90 = arith.addf %88, %89 : vector<1x512xf32>
    %91 = arith.negf %90 : vector<1x512xf32>
    %92 = math.exp %91 : vector<1x512xf32>
    %cst_46 = arith.constant 1.000000e+00 : f32
    %93 = vector.broadcast %cst_46 : f32 to vector<1x512xf32>
    %94 = arith.addf %93, %92 : vector<1x512xf32>
    %95 = arith.divf %93, %94 : vector<1x512xf32>
    %cst_47 = arith.constant 5.000000e-01 : f32
    %96 = vector.broadcast %cst_47 : f32 to vector<1x512xf32>
    %97 = arith.subf %95, %96 : vector<1x512xf32>
    %cst_48 = arith.constant 0.000000e+00 : f32
    %98 = vector.broadcast %cst_48 : f32 to vector<1x512xf32>
    %99 = arith.subf %98, %97 : vector<1x512xf32>
    %100 = arith.mulf %99, %97 : vector<1x512xf32>
    %101 = math.exp %100 : vector<1x512xf32>
    %cst_49 = arith.constant 0.221199214 : f32
    %102 = vector.broadcast %cst_49 : f32 to vector<1x512xf32>
    %103 = arith.addf %101, %102 : vector<1x512xf32>
    %104 = vector.extract_strided_slice %64 {offsets = [0, 0], sizes = [2, 512], strides = [1, 1]} : vector<3x512xf32> to vector<2x512xf32>
    %105 = vector.broadcast %103 : vector<1x512xf32> to vector<2x512xf32>
    %106 = arith.mulf %104, %105 : vector<2x512xf32>
    %c0_50 = arith.constant 0 : index
    %c0_51 = arith.constant 0 : index
    %107 = vector.load %arg8[%c0_50, %c0_51] : memref<2x1xf32, #tpu.memory_space<vmem>>, vector<2x1xf32>
    %c0_52 = arith.constant 0 : index
    %c0_53 = arith.constant 0 : index
    %108 = vector.load %arg9[%c0_52, %c0_53] : memref<2x1xf32, #tpu.memory_space<vmem>>, vector<2x1xf32>
    %cst_54 = arith.constant dense<0.000000e+00> : vector<2xf32>
    %109 = vector.multi_reduction <add>, %106, %cst_54 [1] : vector<2x512xf32> to vector<2xf32>
    %110 = vector.shape_cast %109 : vector<2xf32> to vector<2x1xf32>
    %111 = arith.mulf %106, %106 : vector<2x512xf32>
    %cst_55 = arith.constant dense<0.000000e+00> : vector<2xf32>
    %112 = vector.multi_reduction <add>, %111, %cst_55 [1] : vector<2x512xf32> to vector<2xf32>
    %113 = vector.shape_cast %112 : vector<2xf32> to vector<2x1xf32>
    %cst_56 = arith.constant 0.001953125 : f32
    %114 = vector.broadcast %cst_56 : f32 to vector<2x1xf32>
    %115 = arith.mulf %110, %114 : vector<2x1xf32>
    %cst_57 = arith.constant 0.001953125 : f32
    %116 = vector.broadcast %cst_57 : f32 to vector<2x1xf32>
    %117 = arith.mulf %113, %116 : vector<2x1xf32>
    %118 = arith.mulf %115, %115 : vector<2x1xf32>
    %119 = arith.subf %117, %118 : vector<2x1xf32>
    %cst_58 = arith.constant 0.000000e+00 : f32
    %120 = vector.broadcast %cst_58 : f32 to vector<2x1xf32>
    %121 = arith.maximumf %119, %120 : vector<2x1xf32>
    %cst_59 = arith.constant 9.99999974E-6 : f32
    %122 = vector.broadcast %cst_59 : f32 to vector<2x1xf32>
    %123 = arith.addf %121, %122 : vector<2x1xf32>
    %124 = math.rsqrt %123 : vector<2x1xf32>
    %125 = arith.mulf %107, %124 : vector<2x1xf32>
    %126 = arith.mulf %115, %125 : vector<2x1xf32>
    %127 = arith.subf %108, %126 : vector<2x1xf32>
    %128 = vector.broadcast %125 : vector<2x1xf32> to vector<2x512xf32>
    %129 = arith.mulf %106, %128 : vector<2x512xf32>
    %130 = vector.broadcast %127 : vector<2x1xf32> to vector<2x512xf32>
    %131 = arith.addf %129, %130 : vector<2x512xf32>
    %132 = tpu.concatenate %131, %90 in 0 : vector<2x512xf32>, vector<1x512xf32> -> vector<3x512xf32>
    %c0_60 = arith.constant 0 : index
    %c0_61 = arith.constant 0 : index
    %133 = vector.load %arg10[%c0_60, %c0_61] : memref<3x512xf32, #tpu.memory_space<vmem>>, vector<3x512xf32>
    tpu.vector_store %arg10[%c0_60, %c0_61], %132 {strides = array<i32>} : memref<3x512xf32, #tpu.memory_space<vmem>>, vector<3x512xf32>,
    return
  }
}

</mosaic_0001>

<bundles_post_ra>
// kernel: output_block2_weight2_forward.1
= control target key start
LH: loop header
LB: loop body
LE: loop exit
PB: predicated region body
PF: predicated region fallthrough
CT: control target
= control target key end

     0   :  { %vm49_vm0 = vcmask 1043456   ;;  %s1729_s19 = smov 2   ;;  %s1730_s20 = smov 1   ;;  %vm74_vm1 = vcmask 7168   ;;  %vm101_vm2 = vcmask 15360   ;;  %vm128_vm3 = vcmask 130048   ;;  %s2566_s1 = inlined_call_operand.vmem [shape: f32[8,512], index: 1, kind: input, shape index: {}]   ;;  %s2567_s0 = inlined_call_operand.vmem [shape: f32[4,546], index: 0, kind: input, shape index: {}]   ;;  %s2568_s2 = inlined_call_operand.vmem [shape: f32[64,36], index: 2, kind: input, shape index: {}]   ;;  %s2569_s3 = inlined_call_operand.vmem [shape: f32[64,1], index: 3, kind: input, shape index: {}]   ;;  %s2570_s4 = inlined_call_operand.vmem [shape: f32[64,1], index: 4, kind: input, shape index: {}]   ;;  %s2571_s5 = inlined_call_operand.vmem [shape: f32[3,64], index: 5, kind: input, shape index: {}]   ;;  %s2572_s6 = inlined_call_operand.<no memory space> [shape: f32[1,1], index: 6, kind: input, shape index: {}]   ;;  %s2573_s7 = inlined_call_operand.<no memory space> [shape: f32[1,1], index: 7, kind: input, shape index: {}]   ;;  %s2574_s8 = inlined_call_operand.vmem [shape: f32[2,1], index: 8, kind: input, shape index: {}]   ;;  %s2575_s9 = inlined_call_operand.vmem [shape: f32[2,1], index: 9, kind: input, shape index: {}]   ;;  %s2576_s10 = inlined_call_operand.vmem [shape: f32[3,512], index: 10, kind: output, shape index: {}]  }
   0x1   :  { %v1542_v0 = vld [vmem:[%s2566_s1 + $0x2] ss:$8 sm:$0xf]  ;;  %v1541_v3 = vld [vmem:[%s2566_s1 + $0x1] ss:$8 sm:$0xf] }
   0x2   :  { %v87_v1 = vperm.slane %v1542_v0, 0  ;;  %v88_v2 = vperm.slane %v1542_v0, 1  ;;  %v60_v5 = vperm.slane %v1541_v3, 0  ;;  %v61_v6 = vperm.slane %v1541_v3, 1  ;;  %s1731_s23 = smov 16   ;;  %s1732_s28 = smov 18  }
   0x3   :  { %v90_v7 = vperm.slane %v1542_v0, 3  ;;  %v63_v10 = vperm.slane %v1541_v3, 3  ;;  %v1543_v11 = vld [vmem:[%s2566_s1 + $0x3] ss:$8 sm:$0xf]  ;;  %v89_v15 = vperm.slane %v1542_v0, 2 }
   0x4   :  { %v91_v4 = vrot.slane %v88_v2, 4  ;;  %v64_v9 = vrot.slane %v61_v6, 4  ;;  %v114_v12 = vperm.slane %v1543_v11, 0  ;;  %v115_v13 = vperm.slane %v1543_v11, 1  ;;  %s1733_s11 = smov 32   ;;  %s1734_s12 = smov 33  }
   0x5   :  { %v92_v16 = vrot.slane %v90_v7, 4  ;;  %v117_v18 = vperm.slane %v1543_v11, 3  ;;  %v62_v19 = vperm.slane %v1541_v3, 2  ;;  %v65_v20 = vrot.slane %v63_v10, 4  ;;  %s1735_s13 = smov 34   ;;  %v1841_v3 = vld [vmem:[%s2567_s0] sm:$0xff] }
   0x6   :  { %v93_v8 = vsel %vm49_vm0, %v87_v1, %v91_v4  ;;  %v66_v14 = vsel %vm49_vm0, %v60_v5, %v64_v9  ;;  %v118_v17 = vrot.slane %v115_v13, 4  ;;  %v1544_v22 = vld [vmem:[%s2566_s1 + $0x4] ss:$8 sm:$0xf]  ;;  %v116_v25 = vperm.slane %v1543_v11, 2  ;;  %s1737_s21 = smov 126  }
   0x7   :  { %95 = vrot.lane.b32.xlu1 %v93_v8, %s1729_s19  ;;  %68 = vrot.lane.b32.xlu0 %v66_v14, %s1730_s20  ;;  %v94_v23 = vsel %vm49_vm0, %v89_v15, %v92_v16  ;;  %v144_v24 = vperm.slane %v1544_v22, 3  ;;  %v119_v26 = vrot.slane %v117_v18, 4  ;;  %v67_v27 = vsel %vm49_vm0, %v62_v19, %v65_v20  ;;  %v1545_v31 = vld [vmem:[%s2566_s1 + $0x5] ss:$8 sm:$0xf]  ;;  %s1738_s22 = smov 112  }
   0x8   :  { %v120_v21 = vsel %vm49_vm0, %v114_v12, %v118_v17  ;;  %v142_v28 = vperm.slane %v1544_v22, 1  ;;  %v143_v29 = vperm.slane %v1544_v22, 2  ;;  %v1546_v33 = vld [vmem:[%s2566_s1 + $0x6] ss:$8 sm:$0xf]  ;;  %v169_v34 = vperm.slane %v1545_v31, 1 }
   0x9   :  { %122 = vrot.lane.b32.xlu2 %v120_v21, %s1731_s23  ;;  %v146_v30 = vrot.slane %v144_v24, 4  ;;  %v121_v32 = vsel %vm49_vm0, %v116_v25, %v119_v26  ;;  %v141_v35 = vperm.slane %v1544_v22, 0  ;;  %v196_v38 = vperm.slane %v1546_v33, 1  ;;  %v1547_v49 = vld [vmem:[%s2566_s1 + $0x7] ss:$8 sm:$0xf] }
   0xa   :  { %v145_v36 = vrot.slane %v142_v28, 4  ;;  %v168_v39 = vperm.slane %v1545_v31, 0  ;;  %v172_v40 = vrot.slane %v169_v34, 4  ;;  %v171_v42 = vperm.slane %v1545_v31, 3  ;;  %v1848_v9 = vld [vmem:[%s2567_s0 + $0x8] sm:$0xff]  ;;  %s1740_s24 = smov 110  }
   0xb   :  { %v148_v37 = vsel %vm49_vm0, %v143_v29, %v146_v30  ;;  %v195_v43 = vperm.slane %v1546_v33, 0  ;;  %v199_v44 = vrot.slane %v196_v38, 4  ;;  %v198_v46 = vperm.slane %v1546_v33, 3  ;;  %v41_v63 = vld [vmem:[%s2566_s1] ss:$8 sm:$0xf] }
   0xc   :  { %v147_v41 = vsel %vm49_vm0, %v141_v35, %v145_v36  ;;  %v174_v45 = vsel %vm49_vm0, %v168_v39, %v172_v40  ;;  %v170_v47 = vperm.slane %v1545_v31, 2  ;;  %v173_v48 = vrot.slane %v171_v42, 4  ;;  %v1862_v24 = vld [vmem:[%s2567_s0 + $0x10] sm:$0xf]  ;;  %s1736_s0 = smov 127   ;;  %s1741_s25 = smov 96  }
   0xd   :  { %v201_v50 = vsel %vm49_vm0, %v195_v43, %v199_v44  ;;  %v225_v51 = vperm.slane %v1547_v49, 3  ;;  %v197_v52 = vperm.slane %v1546_v33, 2  ;;  %v200_v53 = vrot.slane %v198_v46, 4  ;;  %s1742_s26 = smov 95   ;;  %s1743_s27 = smov 94  }
   0xe   :  { %v175_v54 = vsel %vm49_vm0, %v170_v47, %v173_v48  ;;  %v223_v55 = vperm.slane %v1547_v49, 1  ;;  %v224_v56 = vperm.slane %v1547_v49, 2  ;;  %v222_v59 = vperm.slane %v1547_v49, 0 }
   0xf   :  { %97 = vrot.lane.b32.xlu1 %v94_v23, %s1729_s19  ;;  %70 = vrot.lane.b32.xlu0 %v67_v27, %s1730_s20  ;;  %v227_v57 = vrot.slane %v225_v51, 4  ;;  %v202_v58 = vsel %vm49_vm0, %v197_v52, %v200_v53  ;;  %v44_v0 = vperm.slane %v41_v63, 1  ;;  %v43_v1 = vperm.slane %v41_v63, 0 }
  0x10   :  { %v226_v60 = vrot.slane %v223_v55, 4  ;;  %v46_v5 = vperm.slane %v41_v63, 3  ;;  %v45_v7 = vperm.slane %v41_v63, 2  ;;  %vm155_vm4 = vcmask 146432  }
  0x11   :  { %124 = vrot.lane.b32.xlu2 %v121_v32, %s1731_s23  ;;  %v229_v61 = vsel %vm49_vm0, %v224_v56, %v227_v57  ;;  %v47_v2 = vrot.slane %v44_v0, 4  ;;  %vm182_vm5 = vcmask 261120   ;;  %s1739_s23 = smov 111   ;;  %vm209_vm6 = vcmask 269312  }
  0x12   :  { %v228_v62 = vsel %vm49_vm0, %v222_v59, %v226_v60  ;;  %v48_v8 = vrot.slane %v46_v5, 4  ;;  %vm236_vm7 = vcmask 277504   ;;  %vm348_vm8 = vcmask 916480  }
  0x13   :  { %v50_v4 = vsel %vm49_vm0, %v43_v1, %v47_v2  ;;  %vm413_vm9 = vcmask 900096   ;;  %vm315_vm10 = vcmask 1031168   ;;  %vm380_vm11 = vcmask 908288  }
  0x14   :  { %v54_v6 = vmul.f32 %v50_v4, %v1841_v3  ;;  %v51_v10 = vsel %vm49_vm0, %v45_v7, %v48_v8  ;;  %vm510_vm12 = vcmask 769024   ;;  %vm445_vm13 = vcmask 785408  }
  0x15   :  { %v55_v11 = vmul.f32 %v51_v10, %v1848_v9  ;;  %vm478_vm14 = vcmask 777216   ;;  %vm283_vm15 = vcmask 1039360  }
  0x16   :  { %248 = vst [vmem:[#allocation1] ss:$2 sm:$0xff] %v54_v6 }
  0x17   :  { %151 = vrot.lane.b32.xlu1 %v148_v37, %s1732_s28  ;;  %149 = vrot.lane.b32.xlu0 %v147_v41, %s1732_s28  ;;  %250 = vst [vmem:[#allocation1 + $0x10] ss:$2 sm:$0xff] %v55_v11 }
  0x19   :  { %176 = vrot.lane.b32.xlu2 %v174_v45, %s1733_s11 }
  0x1d   :  { %v1853_v16 = vld.sshfl [vmem:[#allocation1] sm:$0xff pattern:$0x75316420]  ;;  %v1855_v17 = vld.sshfl [vmem:[#allocation1 + $0x8] sm:$0xff pattern:$0x75316420] }
  0x1e   :  { %v1868_v31 = vld.sshfl [vmem:[#allocation1 + $0x10] sm:$0xff pattern:$0x75316420]  ;;  %v1870_v32 = vld.sshfl [vmem:[#allocation1 + $0x18] sm:$0xff pattern:$0x75316420] }
  0x1f   :  { %203 = vrot.lane.b32.xlu1 %v201_v50, %s1734_s12  ;;  %178 = vrot.lane.b32.xlu0 %v175_v54, %s1733_s11 }
  0x21   :  { %205 = vrot.lane.b32.xlu2 %v202_v58, %s1734_s12 }
  0x27   :  { %232 = vrot.lane.b32.xlu1 %v229_v61, %s1735_s13  ;;  %230 = vrot.lane.b32.xlu0 %v228_v62, %s1735_s13 }
  0x63   :  { %v123_v20 = vpop.permute.xlu2 %122 }
  0x64   :  { %v126_v37 = vrot.slane %v123_v20, 4 }
  0x66   :  { %v129_v41 = vsel %vm128_vm3, %v126_v37, %v123_v20 }
  0x67   :  { %v135_v48 = vmul.f32 %v129_v41, %v1841_v3 }
  0x6b   :  { %v125_v38 = vpop.permute.xlu2 %124 }
  0x6c   :  { %v127_v40 = vrot.slane %v125_v38, 4 }
  0x6e   :  { %v130_v49 = vsel %vm49_vm0, %v126_v37, %v127_v40  ;;  %v137_v53 = vmul.f32 %v127_v40, %v1862_v24 }
  0x6f   :  { %v131_v52 = vsel %vm128_vm3, %v130_v49, %v125_v38 }
  0x70   :  { %v136_v55 = vmul.f32 %v131_v52, %v1848_v9 }
  0x73   :  { %v177_v4 = vpop.permute.xlu2 %176 }
  0x74   :  { %v180_v11 = vrot.slane %v177_v4, 4 }
  0x76   :  { %v183_v20 = vsel %vm182_vm5, %v180_v11, %v177_v4 }
  0x79   :  { %v96_v12 = vpop.permute.xlu1 %95  ;;  %v69_v13 = vpop.permute.xlu0 %68 }
  0x7a   :  { %v72_v14 = vrot.slane %v69_v13, 4  ;;  %v99_v19 = vrot.slane %v96_v12, 4 }
  0x7c   :  { %v75_v15 = vsel %vm74_vm1, %v72_v14, %v69_v13  ;;  %v102_v23 = vsel %vm101_vm2, %v99_v19, %v96_v12 }
  0x7d   :  { %v81_v18 = vmul.f32 %v75_v15, %v1841_v3  ;;  %v108_v28 = vmul.f32 %v102_v23, %v1841_v3 }
  0x7f   :  { %263 = vst [vmem:[#allocation1 + $0x1] ss:$2 sm:$0xff] %v81_v18 }
  0x81   :  { %v98_v21 = vpop.permute.xlu1 %97  ;;  %v71_v22 = vpop.permute.xlu0 %70 }
  0x82   :  { %v73_v25 = vrot.slane %v71_v22, 4  ;;  %v100_v26 = vrot.slane %v98_v21, 4 }
  0x84   :  { %v76_v27 = vsel %vm49_vm0, %v72_v14, %v73_v25  ;;  %v83_v30 = vmul.f32 %v73_v25, %v1862_v24  ;;  %v103_v36 = vsel %vm49_vm0, %v99_v19, %v100_v26  ;;  %v110_v42 = vmul.f32 %v100_v26, %v1862_v24  ;;  %v206_v26 = vpop.permute.xlu2 %205 }
  0x85   :  { %v77_v29 = vsel %vm74_vm1, %v76_v27, %v71_v22  ;;  %v104_v39 = vsel %vm101_vm2, %v103_v36, %v98_v21  ;;  %v189_v27 = vmul.f32 %v183_v20, %v1841_v3  ;;  %vm539_vm1 = vcmask 293888  }
  0x86   :  { %v1872_v33 = vld.sshfl [vmem:[#allocation1] sm:$0xff pattern:$0x75316420]  ;;  %v1874_v34 = vld.sshfl [vmem:[#allocation1 + $0x8] sm:$0xff pattern:$0x75316420]  ;;  %v82_v35 = vmul.f32 %v77_v29, %v1848_v9  ;;  %v109_v44 = vmul.f32 %v104_v39, %v1848_v9 }
  0x87   :  { %295 = vst [vmem:[#allocation1] ss:$2 sm:$0xff] %v108_v28  ;;  %v208_v39 = vrot.slane %v206_v26, 4 }
  0x88   :  { %265 = vst [vmem:[#allocation1 + $0x11] ss:$2 sm:$0xff] %v82_v35 }
  0x89   :  { %267 = vst [vmem:[#allocation1 + $0x21] ss:$2 sm:$0xff] %v83_v30  ;;  %v150_v54 = vpop.permute.xlu0 %149  ;;  %v152_v62 = vpop.permute.xlu1 %151 }
  0x8a   :  { %v153_v59 = vrot.slane %v150_v54, 4  ;;  %v154_v2 = vrot.slane %v152_v62, 4 }
  0x8c   :  { %v156_v1 = vsel %vm155_vm4, %v153_v59, %v150_v54  ;;  %v157_v8 = vsel %vm49_vm0, %v153_v59, %v154_v2  ;;  %v164_v22 = vmul.f32 %v154_v2, %v1862_v24 }
  0x8d   :  { %v162_v5 = vmul.f32 %v156_v1, %v1841_v3  ;;  %v158_v19 = vsel %vm155_vm4, %v157_v8, %v152_v62  ;;  %v218_v1 = vmul.f32 %v208_v39, %v1862_v24 }
  0x8e   :  { %v1881_v43 = vld.sshfl [vmem:[#allocation1 + $0x8] sm:$0xff pattern:$0x75316420]  ;;  %v300_v45 = vld.sshfl [vmem:[#allocation1] sm:$0xff pattern:$0x75316420]  ;;  %v163_v25 = vmul.f32 %v158_v19, %v1848_v9 }
  0x8f   :  { %v270_v46 = vld.sshfl [vmem:[#allocation1 + $0x10] sm:$0xff pattern:$0x75316420]  ;;  %v271_v47 = vld.sshfl [vmem:[#allocation1 + $0x18] sm:$0xff pattern:$0x75316420] }
  0x90   :  { %v1886_v50 = vld.sshfl [vmem:[#allocation1 + $0x20] sm:$0xff pattern:$0x75316420]  ;;  %v1612_v51 = vpack.i.bf16 %v271_v47, %v270_v46  ;;  %297 = vst [vmem:[#allocation1 + $0x10] ss:$2 sm:$0xff] %v109_v44 }
  0x91   :  { %299 = vst [vmem:[#allocation1 + $0x20] ss:$2 sm:$0xff] %v110_v42  ;;  %v179_v14 = vpop.permute.xlu0 %178  ;;  %v204_v23 = vpop.permute.xlu1 %203 }
  0x92   :  { %1613 = vrot.lane.b32.xlu1 %v1612_v51, %s1736_s0  ;;  %328 = vst [vmem:[#allocation1 + $0x1] ss:$2 sm:$0xff] %v135_v48  ;;  %v181_v21 = vrot.slane %v179_v14, 4  ;;  %v207_v36 = vrot.slane %v204_v23, 4 }
  0x94   :  { %v184_v30 = vsel %vm49_vm0, %v180_v11, %v181_v21  ;;  %v210_v44 = vsel %vm209_vm6, %v207_v36, %v204_v23  ;;  %v211_v48 = vsel %vm49_vm0, %v207_v36, %v208_v39 }
  0x95   :  { %v185_v42 = vsel %vm182_vm5, %v184_v30, %v179_v14  ;;  %v216_v51 = vmul.f32 %v210_v44, %v1841_v3 }
  0x96   :  { %v190_v47 = vmul.f32 %v185_v42, %v1848_v9 }
  0x97   :  { %v302_v56 = vld.sshfl [vmem:[#allocation1 + $0x10] sm:$0xff pattern:$0x75316420]  ;;  %v303_v57 = vld.sshfl [vmem:[#allocation1 + $0x18] sm:$0xff pattern:$0x75316420] }
  0x98   :  { %v304_v58 = vld.sshfl [vmem:[#allocation1 + $0x20] sm:$0xff pattern:$0x75316420]  ;;  %v1622_v60 = vpack.i.bf16 %v303_v57, %v302_v56  ;;  %330 = vst [vmem:[#allocation1 + $0x11] ss:$2 sm:$0xff] %v136_v55  ;;  %v212_v57 = vsel %vm209_vm6, %v211_v48, %v206_v26  ;;  %v1677_v26 = vpack.i.bf16 %v1872_v33, %v1886_v50 }
  0x99   :  { %332 = vst [vmem:[#allocation1 + $0x21] ss:$2 sm:$0xff] %v137_v53  ;;  %v1617_v61 = vpack.i.bf16 %v300_v45, %v304_v58  ;;  %v333_v63 = vld.sshfl [vmem:[#allocation1] sm:$0xff pattern:$0x75316420]  ;;  %v191_v45 = vmul.f32 %v181_v21, %v1862_v24  ;;  %v231_v46 = vpop.permute.xlu0 %230  ;;  %v233_v49 = vpop.permute.xlu1 %232  ;;  %v217_v62 = vmul.f32 %v212_v57, %v1848_v9 }
  0x9a   :  { %1623 = vrot.lane.b32.xlu1 %v1622_v60, %s1737_s21  ;;  %v1893_v0 = vld.sshfl [vmem:[#allocation1 + $0x8] sm:$0xff pattern:$0x75316420]  ;;  %v234_v54 = vrot.slane %v231_v46, 4  ;;  %v235_v58 = vrot.slane %v233_v49, 4 }
  0x9b   :  { %1618 = vrot.lane.b32.xlu2 %v1617_v61, %s1737_s21  ;;  %360 = vst [vmem:[#allocation1] ss:$2 sm:$0xff] %v1841_v3 }
  0x9c   :  { %v238_v2 = vsel %vm49_vm0, %v234_v54, %v235_v58 }
  0x9f   :  { %v335_v6 = vld.sshfl [vmem:[#allocation1 + $0x10] sm:$0xff pattern:$0x75316420]  ;;  %v336_v7 = vld.sshfl [vmem:[#allocation1 + $0x18] sm:$0xff pattern:$0x75316420] }
  0xa0   :  { %v337_v10 = vld.sshfl [vmem:[#allocation1 + $0x20] sm:$0xff pattern:$0x75316420]  ;;  %v1632_v12 = vpack.i.bf16 %v336_v7, %v335_v6  ;;  %362 = vst [vmem:[#allocation1 + $0x10] ss:$2 sm:$0xff] %v1848_v9 }
  0xa1   :  { %364 = vst [vmem:[#allocation1 + $0x20] ss:$2 sm:$0xff] %v1862_v24  ;;  %v1627_v13 = vpack.i.bf16 %v333_v63, %v337_v10  ;;  %v237_v63 = vsel %vm236_vm7, %v234_v54, %v231_v46  ;;  %v239_v10 = vsel %vm236_vm7, %v238_v2, %v233_v49 }
  0xa2   :  { %v366_v15 = vld.sshfl [vmem:[#allocation1 + $0x8] sm:$0xff pattern:$0x75316420]  ;;  %v365_v18 = vld.sshfl [vmem:[#allocation1] sm:$0xff pattern:$0x75316420]  ;;  %v243_v4 = vmul.f32 %v237_v63, %v1841_v3  ;;  %v244_v14 = vmul.f32 %v239_v10, %v1848_v9  ;;  %v245_v3 = vmul.f32 %v235_v58, %v1862_v24 }
  0xa3   :  { %1628 = vrot.lane.b32.xlu0 %v1627_v13, %s1738_s22  ;;  %1633 = vrot.lane.b32.xlu2 %v1632_v12, %s1738_s22  ;;  %393 = vst [vmem:[#allocation1 + $0x1] ss:$2 sm:$0xff] %v162_v5 }
  0xa4   :  { %372 = vrot.lane.b32.xlu1 %v366_v15, %s1739_s23 }
  0xa7   :  { %v367_v28 = vld.sshfl [vmem:[#allocation1 + $0x10] sm:$0xff pattern:$0x75316420]  ;;  %v368_v29 = vld.sshfl [vmem:[#allocation1 + $0x18] sm:$0xff pattern:$0x75316420] }
  0xa8   :  { %v369_v35 = vld.sshfl [vmem:[#allocation1 + $0x20] sm:$0xff pattern:$0x75316420]  ;;  %v1642_v37 = vpack.i.bf16 %v368_v29, %v367_v28  ;;  %395 = vst [vmem:[#allocation1 + $0x11] ss:$2 sm:$0xff] %v163_v25 }
  0xa9   :  { %397 = vst [vmem:[#allocation1 + $0x21] ss:$2 sm:$0xff] %v164_v22  ;;  %v1637_v38 = vpack.i.bf16 %v365_v18, %v369_v35 }
  0xaa   :  { %v398_v40 = vld.sshfl [vmem:[#allocation1] sm:$0xff pattern:$0x75316420]  ;;  %v1910_v41 = vld.sshfl [vmem:[#allocation1 + $0x8] sm:$0xff pattern:$0x75316420] }
  0xab   :  { %1638 = vrot.lane.b32.xlu0 %v1637_v38, %s1739_s23  ;;  %425 = vst [vmem:[#allocation1] ss:$2 sm:$0xff] %v189_v27 }
  0xac   :  { %1643 = vrot.lane.b32.xlu1 %v1642_v37, %s1739_s23 }
  0xaf   :  { %v400_v52 = vld.sshfl [vmem:[#allocation1 + $0x10] sm:$0xff pattern:$0x75316420]  ;;  %v401_v53 = vld.sshfl [vmem:[#allocation1 + $0x18] sm:$0xff pattern:$0x75316420] }
  0xb0   :  { %v1652_v55 = vpack.i.bf16 %v401_v53, %v400_v52  ;;  %427 = vst [vmem:[#allocation1 + $0x10] ss:$2 sm:$0xff] %v190_v47  ;;  %v402_v56 = vld.sshfl [vmem:[#allocation1 + $0x20] sm:$0xff pattern:$0x75316420] }
  0xb1   :  { %429 = vst [vmem:[#allocation1 + $0x20] ss:$2 sm:$0xff] %v191_v45  ;;  %v1647_v59 = vpack.i.bf16 %v398_v40, %v402_v56 }
  0xb2   :  { %1653 = vrot.lane.b32.xlu2 %v1652_v55, %s1740_s24  ;;  %v430_v60 = vld.sshfl [vmem:[#allocation1] sm:$0xff pattern:$0x75316420]  ;;  %v431_v61 = vld.sshfl [vmem:[#allocation1 + $0x8] sm:$0xff pattern:$0x75316420] }
  0xb3   :  { %458 = vst [vmem:[#allocation1 + $0x1] ss:$2 sm:$0xff] %v216_v51 }
  0xb4   :  { %1648 = vrot.lane.b32.xlu1 %v1647_v59, %s1740_s24 }
  0xb7   :  { %v432_v5 = vld.sshfl [vmem:[#allocation1 + $0x10] sm:$0xff pattern:$0x75316420]  ;;  %v433_v6 = vld.sshfl [vmem:[#allocation1 + $0x18] sm:$0xff pattern:$0x75316420] }
  0xb8   :  { %v434_v7 = vld.sshfl [vmem:[#allocation1 + $0x20] sm:$0xff pattern:$0x75316420]  ;;  %v1662_v8 = vpack.i.bf16 %v433_v6, %v432_v5  ;;  %460 = vst [vmem:[#allocation1 + $0x11] ss:$2 sm:$0xff] %v217_v62 }
  0xb9   :  { %462 = vst [vmem:[#allocation1 + $0x21] ss:$2 sm:$0xff] %v218_v1  ;;  %v1657_v11 = vpack.i.bf16 %v430_v60, %v434_v7 }
  0xba   :  { %437 = vrot.lane.b32.xlu2 %v431_v61, %s1741_s25  ;;  %v464_v12 = vld.sshfl [vmem:[#allocation1 + $0x8] sm:$0xff pattern:$0x75316420]  ;;  %v463_v13 = vld.sshfl [vmem:[#allocation1] sm:$0xff pattern:$0x75316420] }
  0xbb   :  { %1658 = vrot.lane.b32.xlu0 %v1657_v11, %s1741_s25  ;;  %490 = vst [vmem:[#allocation1] ss:$2 sm:$0xff] %v243_v4 }
  0xbc   :  { %1663 = vrot.lane.b32.xlu1 %v1662_v8, %s1741_s25 }
  0xbf   :  { %v465_v15 = vld.sshfl [vmem:[#allocation1 + $0x10] sm:$0xff pattern:$0x75316420]  ;;  %v466_v18 = vld.sshfl [vmem:[#allocation1 + $0x18] sm:$0xff pattern:$0x75316420] }
  0xc0   :  { %v1672_v19 = vpack.i.bf16 %v466_v18, %v465_v15  ;;  %492 = vst [vmem:[#allocation1 + $0x10] ss:$2 sm:$0xff] %v244_v14  ;;  %v467_v20 = vld.sshfl [vmem:[#allocation1 + $0x20] sm:$0xff pattern:$0x75316420] }
  0xc1   :  { %494 = vst [vmem:[#allocation1 + $0x20] ss:$2 sm:$0xff] %v245_v3  ;;  %v1667_v21 = vpack.i.bf16 %v463_v13, %v467_v20 }
  0xc2   :  { %1673 = vrot.lane.b32.xlu2 %v1672_v19, %s1742_s26  ;;  %v495_v22 = vld.sshfl [vmem:[#allocation1] sm:$0xff pattern:$0x75316420]  ;;  %v496_v24 = vld.sshfl [vmem:[#allocation1 + $0x8] sm:$0xff pattern:$0x75316420] }
  0xc3   :  { %470 = vrot.lane.b32.xlu0 %v464_v12, %s1742_s26 }
  0xc4   :  { %1668 = vrot.lane.b32.xlu1 %v1667_v21, %s1742_s26 }
  0xc7   :  { %v497_v9 = vld.sshfl [vmem:[#allocation1 + $0x10] sm:$0xff pattern:$0x75316420]  ;;  %v498_v25 = vld.sshfl [vmem:[#allocation1 + $0x18] sm:$0xff pattern:$0x75316420] }
  0xc8   :  { %v499_v23 = vld.sshfl [vmem:[#allocation1 + $0x20] sm:$0xff pattern:$0x75316420] }
  0xca   :  { %500 = vrot.lane.b32.xlu2 %v495_v22, %s1743_s27 }
  0xcb   :  { %508 = vrot.lane.b32.xlu0 %v499_v23, %s1743_s27 }
  0xcc   :  { %307 = vrot.lane.b32.xlu1 %v1881_v43, %s1737_s21 }
  0xd2   :  { %504 = vrot.lane.b32.xlu2 %v497_v9, %s1743_s27 }
  0xd3   :  { %502 = vrot.lane.b32.xlu0 %v496_v24, %s1743_s27 }
  0xda   :  { %405 = vrot.lane.b32.xlu2 %v1910_v41, %s1740_s24 }
  0xdb   :  { %506 = vrot.lane.b32.xlu0 %v498_v25, %s1743_s27 }
  0xe2   :  { %340 = vrot.lane.b32.xlu2 %v1893_v0, %s1738_s22 }
  0xe3   :  { %1678 = vrot.lane.b32.xlu0 %v1677_v26, %s1736_s0 }
  0xeb   :  { %275 = vrot.lane.b32.xlu0 %v1874_v34, %s1736_s0 }
  0xf5   :  { %v1940_v43 = vpop.permute.xlu2 %1618 }
  0xf6   :  { %v1621_v49 = vunpack.i.h.bf16 %v1940_v43 }
  0xfd   :  { %v1942_v27 = vpop.permute.xlu2 %1633 }
  0xfe   :  { %v1635_v55 = vunpack.i.l.bf16 %v1942_v27  ;;  %v1636_v9 = vunpack.i.h.bf16 %v1942_v27 }
 0x104   :  { %v1944_v28 = vpop.permute.xlu1 %1613 }
 0x105   :  { %v1616_v24 = vunpack.i.h.bf16 %v1944_v28 }
 0x10c   :  { %v1946_v29 = vpop.permute.xlu1 %1623  ;;  %v1948_v30 = vpop.permute.xlu2 %1653 }
 0x10d   :  { %v1655_v56 = vunpack.i.l.bf16 %v1948_v30  ;;  %v1625_v7 = vunpack.i.l.bf16 %v1946_v29 }
 0x114   :  { %v438_v35 = vpop.permute.xlu2 %437 }
 0x115   :  { %v1950_v50 = vpop.permute.xlu0 %1628 }
 0x116   :  { %v373_v33 = vpop.permute.xlu1 %372  ;;  %v1631_v57 = vunpack.i.h.bf16 %v1950_v50 }
 0x11c   :  { %v1952_v0 = vpop.permute.xlu2 %1673 }
 0x11d   :  { %v1956_v37 = vpop.permute.xlu0 %1638  ;;  %v1675_v53 = vunpack.i.l.bf16 %v1952_v0  ;;  %v1676_v21 = vunpack.i.h.bf16 %v1952_v0 }
 0x11e   :  { %v1954_v36 = vpop.permute.xlu1 %1643  ;;  %v1641_v47 = vunpack.i.h.bf16 %v1956_v37 }
 0x11f   :  { %v1645_v51 = vunpack.i.l.bf16 %v1954_v36  ;;  %v1646_v25 = vunpack.i.h.bf16 %v1954_v36 }
 0x120   :  { %v381_v63 = vsel %vm380_vm11, %v1641_v47, %v373_v33  ;;  %v1615_v47 = vunpack.i.l.bf16 %v1944_v28 }
 0x121   :  { %v382_v6 = vsel %vm380_vm11, %v373_v33, %v1645_v51  ;;  %v1656_v33 = vunpack.i.h.bf16 %v1948_v30  ;;  %v383_v28 = vsel %vm380_vm11, %v1645_v51, %v1646_v25 }
 0x124   :  { %v501_v34 = vpop.permute.xlu2 %500 }
 0x126   :  { %v1958_v38 = vpop.permute.xlu1 %1648 }
 0x127   :  { %v1651_v58 = vunpack.i.h.bf16 %v1958_v38  ;;  %v1650_v26 = vunpack.i.l.bf16 %v1958_v38 }
 0x12c   :  { %v1962_v40 = vpop.permute.xlu2 %504 }
 0x12d   :  { %v1960_v39 = vpop.permute.xlu0 %1658 }
 0x12e   :  { %v1964_v41 = vpop.permute.xlu1 %1663  ;;  %v1661_v52 = vunpack.i.h.bf16 %v1960_v39 }
 0x12f   :  { %v1665_v54 = vunpack.i.l.bf16 %v1964_v41  ;;  %v1666_v12 = vunpack.i.h.bf16 %v1964_v41  ;;  %v1630_v41 = vunpack.i.l.bf16 %v1950_v50  ;;  %v1640_v50 = vunpack.i.l.bf16 %v1956_v37 }
 0x130   :  { %v446_v5 = vsel %vm445_vm13, %v1661_v52, %v438_v35  ;;  %v417_v52 = vsel %vm413_vm9, %v1656_v33, %v1650_v26  ;;  %v416_v37 = vsel %vm413_vm9, %v1655_v56, %v1656_v33 }
 0x131   :  { %v447_v11 = vsel %vm445_vm13, %v438_v35, %v1665_v54  ;;  %v1626_v35 = vunpack.i.h.bf16 %v1946_v29  ;;  %v352_v36 = vsel %vm348_vm8, %v1636_v9, %v1630_v41 }
 0x133   :  { %v318_v51 = vsel %vm315_vm10, %v1625_v7, %v1626_v35 }
 0x134   :  { %v406_v44 = vpop.permute.xlu2 %405 }
 0x135   :  { %v471_v42 = vpop.permute.xlu0 %470  ;;  %v414_v8 = vsel %vm413_vm9, %v1651_v58, %v406_v44  ;;  %v415_v10 = vsel %vm413_vm9, %v406_v44, %v1655_v56  ;;  %v286_v56 = vsel %vm283_vm15, %v1615_v47, %v1616_v24 }
 0x136   :  { %v1966_v45 = vpop.permute.xlu1 %1668  ;;  %v480_v59 = vsel %vm478_vm14, %v471_v42, %v1675_v53  ;;  %v523_v22 = vsel %vm49_vm0, %v381_v63, %v414_v8  ;;  %v524_v23 = vsel %vm49_vm0, %v382_v6, %v415_v10  ;;  %v517_v27 = vsel %vm49_vm0, %v1868_v31, %v286_v56  ;;  %v532_v8 = vld [vmem:[%s2568_s2 + $0x8] sm:$0xff] }
 0x137   :  { %v1671_v48 = vunpack.i.h.bf16 %v1966_v45  ;;  %v528_v3 = vsel %vm49_vm0, %v447_v11, %v480_v59  ;;  %v1670_v15 = vunpack.i.l.bf16 %v1966_v45  ;;  %v448_v45 = vsel %vm445_vm13, %v1665_v54, %v1666_v12  ;;  %v536_v10 = vld [vmem:[%s2568_s2 + $0x28] sm:$0xff]  ;;  %v537_v11 = vld [vmem:[%s2568_s2 + $0x30] sm:$0xff] }
 0x138   :  { %v384_v54 = vsel %vm380_vm11, %v1646_v25, %v1640_v50 }
 0x139   :  { %v479_v62 = vsel %vm478_vm14, %v1671_v48, %v471_v42  ;;  %v1660_v42 = vunpack.i.l.bf16 %v1960_v39  ;;  %v482_v38 = vsel %vm478_vm14, %v1676_v21, %v1670_v15  ;;  %v526_v58 = vsel %vm49_vm0, %v384_v54, %v417_v52 }
 0x13a   :  { %v527_v14 = vsel %vm49_vm0, %v446_v5, %v479_v62  ;;  %v531_v62 = vld [vmem:[%s2568_s2] sm:$0xff] }
 0x13b   :  { %v449_v39 = vsel %vm445_vm13, %v1666_v12, %v1660_v42  ;;  %v538_v12 = vld [vmem:[%s2568_s2 + $0x38] sm:$0xff] }
 0x13c   :  { %v341_v60 = vpop.permute.xlu2 %340 }
 0x13d   :  { %v1968_v46 = vpop.permute.xlu0 %508  ;;  %v349_v13 = vsel %vm348_vm8, %v1631_v57, %v341_v60  ;;  %v350_v20 = vsel %vm348_vm8, %v341_v60, %v1635_v55  ;;  %v525_v57 = vsel %vm49_vm0, %v383_v28, %v416_v37 }
 0x13e   :  { %v308_v1 = vpop.permute.xlu1 %307 }
 0x13f   :  { %v316_v18 = vsel %vm315_vm10, %v1621_v49, %v308_v1  ;;  %v317_v19 = vsel %vm315_vm10, %v308_v1, %v1625_v7  ;;  %v481_v49 = vsel %vm478_vm14, %v1675_v53, %v1676_v21  ;;  %v1620_v53 = vunpack.i.l.bf16 %v1940_v43 }
 0x140   :  { %v519_v0 = vsel %vm49_vm0, %v316_v18, %v349_v13  ;;  %v351_v43 = vsel %vm348_vm8, %v1635_v55, %v1636_v9 }
 0x141   :  { %v319_v30 = vsel %vm315_vm10, %v1626_v35, %v1620_v53  ;;  %v521_v60 = vsel %vm49_vm0, %v318_v51, %v351_v43 }
 0x142   :  { %v522_v59 = vsel %vm49_vm0, %v319_v30, %v352_v36 }
 0x145   :  { %v503_v61 = vpop.permute.xlu0 %502 }
 0x146   :  { %v511_v2 = vsel %vm510_vm12, %v501_v34, %v503_v61  ;;  %v512_v4 = vsel %vm510_vm12, %v503_v61, %v1962_v40  ;;  %v520_v34 = vsel %vm49_vm0, %v317_v19, %v350_v20 }
 0x147   :  { %1548 = vmatpush.msk.msra.mxu0 %vm49_vm0, %v511_v2  ;;  %1557 = vmatpush.msk.msra.mxu1 %vm49_vm0, %v512_v4 }
 0x149   :  { %584 = vmatpush.msra.mxu0 %v527_v14  ;;  %625 = vmatpush.msra.mxu1 %v528_v3 }
 0x14b   :  { %585 = vmatpush.msra.mxu0 %v523_v22  ;;  %626 = vmatpush.msra.mxu1 %v524_v23 }
 0x14d   :  { %v507_v44 = vpop.permute.xlu0 %506  ;;  %586 = vmatpush.msra.mxu0 %v519_v0  ;;  %627 = vmatpush.msra.mxu1 %v520_v34 }
 0x14e   :  { %v513_v29 = vsel %vm510_vm12, %v1962_v40, %v507_v44  ;;  %v514_v48 = vsel %vm510_vm12, %v507_v44, %v1968_v46  ;;  %v529_v40 = vsel %vm49_vm0, %v448_v45, %v481_v49  ;;  %v530_v46 = vsel %vm49_vm0, %v449_v39, %v482_v38 }
 0x14f   :  { %1566 = vmatpush.msk.msra.mxu2 %vm49_vm0, %v513_v29  ;;  %1575 = vmatpush.msk.msra.mxu3 %vm49_vm0, %v514_v48 }
 0x151   :  { %666 = vmatpush.msra.mxu2 %v529_v40  ;;  %707 = vmatpush.msra.mxu3 %v530_v46 }
 0x153   :  { %667 = vmatpush.msra.mxu2 %v525_v57  ;;  %708 = vmatpush.msra.mxu3 %v526_v58 }
 0x155   :  { %709 = vmatpush.msra.mxu3 %v522_v59  ;;  %v1679_v61 = vpop.permute.xlu0 %1678  ;;  %668 = vmatpush.msra.mxu2 %v521_v60 }
 0x156   :  { %v1680_v63 = vunpack.i.l.bf16 %v1679_v61  ;;  %v1681_v2 = vunpack.i.h.bf16 %v1679_v61 }
 0x157   :  { %669 = vmatpush.msra.mxu2 %v517_v27 }
 0x158   :  { %v287_v55 = vsel %vm283_vm15, %v1616_v24, %v1680_v63  ;;  %1567 = vmatmul.msk.f32.vlgmr.msra.gmra.mxu2 %vm539_vm1, %v531_v62 }
 0x159   :  { %v518_v1 = vsel %vm49_vm0, %v1870_v32, %v287_v55  ;;  %v535_v32 = vld [vmem:[%s2568_s2 + $0x20] sm:$0xff] }
 0x15a   :  { %710 = vmatpush.msra.mxu3 %v518_v1 }
 0x15b   :  { %1576 = vmatmul.msk.f32.vlgmr.msra.gmra.mxu3 %vm539_vm1, %v531_v62 }
 0x15d   :  { %v276_v4 = vpop.permute.xlu0 %275 }
 0x15e   :  { %v284_v5 = vsel %vm283_vm15, %v1681_v2, %v276_v4  ;;  %v285_v6 = vsel %vm283_vm15, %v276_v4, %v1615_v47 }
 0x15f   :  { %v515_v31 = vsel %vm49_vm0, %v1853_v16, %v284_v5  ;;  %v516_v7 = vsel %vm49_vm0, %v1855_v17, %v285_v6  ;;  %v533_v16 = vld [vmem:[%s2568_s2 + $0x10] sm:$0xff]  ;;  %v534_v17 = vld [vmem:[%s2568_s2 + $0x18] sm:$0xff] }
 0x160   :  { %587 = vmatpush.msra.mxu0 %v515_v31  ;;  %628 = vmatpush.msra.mxu1 %v516_v7 }
 0x161   :  { %1549 = vmatmul.msk.f32.vlgmr.msra.gmra.mxu0 %vm539_vm1, %v531_v62  ;;  %1558 = vmatmul.msk.f32.vlgmr.msra.gmra.mxu1 %vm539_vm1, %v531_v62 }
 0x162   :  { %1568 = vmatmul.msk.f32.gmra.mxu2 %vm539_vm1, %v532_v8 }
 0x163   :  { %1577 = vmatmul.msk.f32.gmra.mxu3 %vm539_vm1, %v532_v8 }
 0x169   :  { %1550 = vmatmul.msk.f32.gmra.mxu0 %vm539_vm1, %v532_v8  ;;  %1559 = vmatmul.msk.f32.gmra.mxu1 %vm539_vm1, %v532_v8 }
 0x16a   :  { %1569 = vmatmul.msk.f32.gmra.mxu2 %vm539_vm1, %v533_v16 }
 0x16b   :  { %1578 = vmatmul.msk.f32.gmra.mxu3 %vm539_vm1, %v533_v16 }
 0x171   :  { %1551 = vmatmul.msk.f32.gmra.mxu0 %vm539_vm1, %v533_v16  ;;  %1560 = vmatmul.msk.f32.gmra.mxu1 %vm539_vm1, %v533_v16 }
 0x172   :  { %1570 = vmatmul.msk.f32.gmra.mxu2 %vm539_vm1, %v534_v17 }
 0x173   :  { %1579 = vmatmul.msk.f32.gmra.mxu3 %vm539_vm1, %v534_v17 }
 0x179   :  { %1552 = vmatmul.msk.f32.gmra.mxu0 %vm539_vm1, %v534_v17  ;;  %1561 = vmatmul.msk.f32.gmra.mxu1 %vm539_vm1, %v534_v17 }
 0x17a   :  { %1571 = vmatmul.msk.f32.gmra.mxu2 %vm539_vm1, %v535_v32 }
 0x17b   :  { %1580 = vmatmul.msk.f32.gmra.mxu3 %vm539_vm1, %v535_v32 }
 0x181   :  { %1553 = vmatmul.msk.f32.gmra.mxu0 %vm539_vm1, %v535_v32  ;;  %1562 = vmatmul.msk.f32.gmra.mxu1 %vm539_vm1, %v535_v32 }
 0x182   :  { %1572 = vmatmul.msk.f32.gmra.mxu2 %vm539_vm1, %v536_v10 }
 0x183   :  { %1581 = vmatmul.msk.f32.gmra.mxu3 %vm539_vm1, %v536_v10 }
 0x189   :  { %1554 = vmatmul.msk.f32.gmra.mxu0 %vm539_vm1, %v536_v10  ;;  %1563 = vmatmul.msk.f32.gmra.mxu1 %vm539_vm1, %v536_v10 }
 0x18a   :  { %1573 = vmatmul.msk.f32.gmra.mxu2 %vm539_vm1, %v537_v11 }
 0x18b   :  { %1582 = vmatmul.msk.f32.gmra.mxu3 %vm539_vm1, %v537_v11 }
 0x191   :  { %1555 = vmatmul.msk.f32.gmra.mxu0 %vm539_vm1, %v537_v11  ;;  %1564 = vmatmul.msk.f32.gmra.mxu1 %vm539_vm1, %v537_v11 }
 0x192   :  { %1574 = vmatmul.msk.f32.gmra.mxu2 %vm539_vm1, %v538_v12 }
 0x193   :  { %1583 = vmatmul.msk.f32.gmra.mxu3 %vm539_vm1, %v538_v12 }
 0x199   :  { %1556 = vmatmul.msk.f32.gmra.mxu0 %vm539_vm1, %v538_v12  ;;  %1565 = vmatmul.msk.f32.gmra.mxu1 %vm539_vm1, %v538_v12 }
 0x1db   :  { %v2123_v13 = vpop.f32.mrf.mxu2 }
 0x1de   :  { %v2125_v14 = vpop.f32.mrf.mxu0  ;;  %v2127_v3 = vpop.f32.mrf.mxu1 }
 0x1df   :  { %v2129_v15 = vpop.f32.mrf.mxu3 }
 0x1e0   :  { %2578 = vst [vmem:[#allocation4_spill] sm:$0xff] %v2129_v15 }
 0x1e5   :  { %v2131_v18 = vpop.f32.mrf.mxu2 }
 0x1e6   :  { %v2133_v19 = vpop.f32.mrf.mxu0  ;;  %v2135_v20 = vpop.f32.mrf.mxu1 }
 0x1e7   :  { %v757_v21 = vadd.f32 %v2135_v20, %v2133_v19  ;;  %v2139_v22 = vpop.f32.mrf.mxu3 }
 0x1e9   :  { %v758_v23 = vadd.f32 %v757_v21, %v2131_v18 }
 0x1eb   :  { %v759_v9 = vadd.f32 %v758_v23, %v2139_v22 }
 0x1ed   :  { %760 = vadd.xlane.f32.xlu2 %v759_v9  ;;  %v2143_v24 = vpop.f32.mrf.mxu2 }
 0x1ee   :  { %v2145_v25 = vpop.f32.mrf.mxu0  ;;  %v2147_v26 = vpop.f32.mrf.mxu1 }
 0x1ef   :  { %v762_v35 = vadd.f32 %v2147_v26, %v2145_v25  ;;  %v2151_v33 = vpop.f32.mrf.mxu3 }
 0x1f1   :  { %v763_v0 = vadd.f32 %v762_v35, %v2143_v24 }
 0x1f3   :  { %v764_v34 = vadd.f32 %v763_v0, %v2151_v33 }
 0x1f5   :  { %765 = vadd.xlane.f32.xlu0 %v764_v34  ;;  %v2155_v41 = vpop.f32.mrf.mxu2 }
 0x1f6   :  { %v2157_v42 = vpop.f32.mrf.mxu0  ;;  %v2159_v44 = vpop.f32.mrf.mxu1  ;;  %v806_v49 = vmul.f32 %v2155_v41, %v2155_v41 }
 0x1f7   :  { %v804_v45 = vmul.f32 %v2157_v42, %v2157_v42  ;;  %v767_v38 = vadd.f32 %v2159_v44, %v2157_v42  ;;  %v805_v47 = vmul.f32 %v2159_v44, %v2159_v44  ;;  %v2167_v29 = vpop.f32.mrf.mxu3 }
 0x1f8   :  { %v807_v46 = vmul.f32 %v2167_v29, %v2167_v29 }
 0x1f9   :  { %v768_v48 = vadd.f32 %v767_v38, %v2155_v41  ;;  %v839_v39 = vadd.f32 %v805_v47, %v804_v45 }
 0x1fb   :  { %v769_v50 = vadd.f32 %v768_v48, %v2167_v29  ;;  %v840_v51 = vadd.f32 %v839_v39, %v806_v49  ;;  %v796_v48 = vmul.f32 %v2133_v19, %v2133_v19  ;;  %v797_v49 = vmul.f32 %v2135_v20, %v2135_v20 }
 0x1fd   :  { %770 = vadd.xlane.f32.xlu1 %v769_v50  ;;  %v2173_v28 = vpop.f32.mrf.mxu2  ;;  %v841_v30 = vadd.f32 %v840_v51, %v807_v46 }
 0x1fe   :  { %v2175_v52 = vpop.f32.mrf.mxu0  ;;  %v2177_v40 = vpop.f32.mrf.mxu1  ;;  %v810_v58 = vmul.f32 %v2173_v28, %v2173_v28 }
 0x1ff   :  { %v808_v37 = vmul.f32 %v2175_v52, %v2175_v52  ;;  %v772_v53 = vadd.f32 %v2177_v40, %v2175_v52  ;;  %v809_v54 = vmul.f32 %v2177_v40, %v2177_v40  ;;  %v2187_v36 = vpop.f32.mrf.mxu3 }
 0x200   :  { %v811_v62 = vmul.f32 %v2187_v36, %v2187_v36 }
 0x201   :  { %v773_v57 = vadd.f32 %v772_v53, %v2173_v28  ;;  %v844_v56 = vadd.f32 %v809_v54, %v808_v37 }
 0x203   :  { %v774_v43 = vadd.f32 %v773_v57, %v2187_v36  ;;  %v845_v2 = vadd.f32 %v844_v56, %v810_v58  ;;  %v800_v58 = vmul.f32 %v2145_v25, %v2145_v25 }
 0x205   :  { %842 = vadd.xlane.f32.xlu1 %v841_v30  ;;  %775 = vadd.xlane.f32.xlu2 %v774_v43  ;;  %v2193_v59 = vpop.f32.mrf.mxu2  ;;  %v846_v31 = vadd.f32 %v845_v2, %v811_v62  ;;  %v801_v30 = vmul.f32 %v2147_v26, %v2147_v26  ;;  %v829_v2 = vadd.f32 %v797_v49, %v796_v48 }
 0x206   :  { %v2195_v60 = vpop.f32.mrf.mxu0  ;;  %v2197_v61 = vpop.f32.mrf.mxu1  ;;  %v814_v55 = vmul.f32 %v2193_v59, %v2193_v59  ;;  %v795_v49 = vmul.f32 %v2129_v15, %v2129_v15 }
 0x207   :  { %v812_v63 = vmul.f32 %v2195_v60, %v2195_v60  ;;  %v813_v27 = vmul.f32 %v2197_v61, %v2197_v61  ;;  %v2207_v1 = vpop.f32.mrf.mxu3  ;;  %v777_v6 = vadd.f32 %v2197_v61, %v2195_v60 }
 0x208   :  { %v815_v4 = vmul.f32 %v2207_v1, %v2207_v1 }
 0x209   :  { %v849_v5 = vadd.f32 %v813_v27, %v812_v63  ;;  %v778_v23 = vadd.f32 %v777_v6, %v2193_v59  ;;  %v798_v63 = vmul.f32 %v2131_v18, %v2131_v18 }
 0x20b   :  { %v850_v7 = vadd.f32 %v849_v5, %v814_v55  ;;  %v779_v34 = vadd.f32 %v778_v23, %v2207_v1  ;;  %v802_v5 = vmul.f32 %v2143_v24, %v2143_v24  ;;  %v803_v23 = vmul.f32 %v2151_v33, %v2151_v33 }
 0x20d   :  { %847 = vadd.xlane.f32.xlu2 %v846_v31  ;;  %v851_v8 = vadd.f32 %v850_v7, %v815_v4  ;;  %v2213_v16 = vpop.f32.mrf.mxu2  ;;  %v752_v4 = vadd.f32 %v2127_v3, %v2125_v14  ;;  %v834_v7 = vadd.f32 %v801_v30, %v800_v58  ;;  %v1744_v58 = vmov 0  }
 0x20e   :  { %v2215_v17 = vpop.f32.mrf.mxu0  ;;  %v2217_v32 = vpop.f32.mrf.mxu1  ;;  %v818_v12 = vmul.f32 %v2213_v16, %v2213_v16  ;;  %1683 = vset.pattern.permute.xlu1 %v1744_v58  ;;  %1684 = vset.pattern.permute.xlu2 %v1744_v58 }
 0x20f   :  { %v816_v10 = vmul.f32 %v2215_v17, %v2215_v17  ;;  %v817_v11 = vmul.f32 %v2217_v32, %v2217_v32  ;;  %852 = vadd.xlane.f32.xlu0 %v851_v8  ;;  %v2225_v21 = vpop.f32.mrf.mxu3  ;;  %v782_v0 = vadd.f32 %v2217_v32, %v2215_v17  ;;  %v799_v8 = vmul.f32 %v2139_v22, %v2139_v22 }
 0x210   :  { %v819_v9 = vmul.f32 %v2225_v21, %v2225_v21  ;;  %1682 = vset.pattern.permute.xlu0 %v1744_v58 }
 0x211   :  { %v854_v35 = vadd.f32 %v817_v11, %v816_v10  ;;  %v783_v46 = vadd.f32 %v782_v0, %v2213_v16  ;;  %v830_v10 = vadd.f32 %v829_v2, %v798_v63  ;;  %v792_v11 = vmul.f32 %v2125_v14, %v2125_v14 }
 0x213   :  { %v855_v45 = vadd.f32 %v854_v35, %v818_v12  ;;  %v784_v27 = vadd.f32 %v783_v46, %v2225_v21  ;;  %v793_v12 = vmul.f32 %v2127_v3, %v2127_v3  ;;  %v753_v35 = vadd.f32 %v752_v4, %v2123_v13 }
 0x214   :  { %v831_v0 = vadd.f32 %v830_v10, %v799_v8 }
 0x215   :  { %780 = vadd.xlane.f32.xlu2 %v779_v34  ;;  %v856_v38 = vadd.f32 %v855_v45, %v819_v9  ;;  %v2233_v47 = vpop.f32.mrf.mxu2  ;;  %v835_v9 = vadd.f32 %v834_v7, %v802_v5  ;;  %v794_v34 = vmul.f32 %v2123_v13, %v2123_v13  ;;  %v824_v48 = vadd.f32 %v793_v12, %v792_v11 }
 0x216   :  { %v2239_v50 = vpop.f32.mrf.mxu0  ;;  %v2241_v39 = vpop.f32.mrf.mxu1  ;;  %v822_v51 = vmul.f32 %v2233_v47, %v2233_v47 }
 0x217   :  { %v820_v37 = vmul.f32 %v2239_v50, %v2239_v50  ;;  %v787_v53 = vadd.f32 %v2241_v39, %v2239_v50  ;;  %v821_v54 = vmul.f32 %v2241_v39, %v2241_v39  ;;  %857 = vadd.xlane.f32.xlu1 %v856_v38  ;;  %v2252_v57 = vpop.f32.mrf.mxu3  ;;  %v836_v45 = vadd.f32 %v835_v9, %v803_v23 }
 0x218   :  { %v823_v43 = vmul.f32 %v2252_v57, %v2252_v57  ;;  %v754_v38 = vadd.f32 %v753_v35, %v2129_v15  ;;  %v825_v46 = vadd.f32 %v824_v48, %v794_v34 }
 0x219   :  { %v859_v56 = vadd.f32 %v821_v54, %v820_v37  ;;  %v788_v62 = vadd.f32 %v787_v53, %v2233_v47 }
 0x21a   :  { %v826_v37 = vadd.f32 %v825_v46, %v795_v49 }
 0x21b   :  { %v860_v55 = vadd.f32 %v859_v56, %v822_v51  ;;  %v789_v31 = vadd.f32 %v788_v62, %v2252_v57 }
 0x21d   :  { %785 = vadd.xlane.f32.xlu2 %v784_v27  ;;  %v861_v6 = vadd.f32 %v860_v55, %v823_v43 }
 0x21f   :  { %862 = vadd.xlane.f32.xlu0 %v861_v6  ;;  %790 = vadd.xlane.f32.xlu1 %v789_v31 }
 0x225   :  { %832 = vadd.xlane.f32.xlu2 %v831_v0 }
 0x227   :  { %837 = vadd.xlane.f32.xlu0 %v836_v45  ;;  %755 = vadd.xlane.f32.xlu1 %v754_v38 }
 0x22f   :  { %827 = vadd.xlane.f32.xlu0 %v826_v37 }
 0x260   :  { %v761_v53 = vpop.xlane.xlu2 %760 }
 0x268   :  { %v766_v4 = vpop.xlane.xlu0 %765 }
 0x270   :  { %v771_v54 = vpop.xlane.xlu1 %770 }
 0x271   :  { %v2283_v51 = vmul.f32 0.001953125, %v771_v54 }
 0x273   :  { %v883_v56 = vmul.f32 %v2283_v51, %v2283_v51 }
 0x278   :  { %v843_v30 = vpop.xlane.xlu1 %842  ;;  %v776_v43 = vpop.xlane.xlu2 %775 }
 0x279   :  { %v875_v62 = vmul.f32 0.001953125, %v843_v30  ;;  %v2287_v55 = vmul.f32 0.001953125, %v776_v43 }
 0x27b   :  { %v891_v63 = vsub.f32 %v875_v62, %v883_v56  ;;  %v884_v6 = vmul.f32 %v2287_v55, %v2287_v55 }
 0x27d   :  { %v899_v27 = vmax.f32 %v891_v63, 0.0  ;;  %v739_v63 = vld [vmem:[%s2569_s3 + $0x18] sm:$0xff] }
 0x27f   :  { %v907_v2 = vadd.f32 1e-05, %v899_v27 }
 0x280   :  { %v848_v5 = vpop.xlane.xlu2 %847 }
 0x281   :  { %1685 = vrsqrt.f32 %v907_v2  ;;  %v876_v31 = vmul.f32 0.001953125, %v848_v5  ;;  %vm948_vm3 = vweird.f32 %v907_v2 }
 0x282   :  { %v853_v23 = vpop.xlane.xlu0 %852 }
 0x283   :  { %v892_v7 = vsub.f32 %v876_v31, %v884_v6  ;;  %v877_v45 = vmul.f32 0.001953125, %v853_v23 }
 0x285   :  { %v900_v8 = vmax.f32 %v892_v7, 0.0 }
 0x287   :  { %v1686_v10 = vpop.eup %1685  ;;  %v908_v11 = vadd.f32 1e-05, %v900_v8 }
 0x288   :  { %v943_v12 = vmul.f32 %v1686_v10, %v907_v2  ;;  %v781_v9 = vpop.xlane.xlu2 %780  ;;  %vm949_vm2 = vweird.f32 %v1686_v10 }
 0x289   :  { %1687 = vrsqrt.f32 %v908_v11  ;;  %v2291_v35 = vmul.f32 0.001953125, %v781_v9  ;;  %vm950_vm4 = vmor %vm948_vm3, %vm949_vm2  ;;  %v2309_v9 = vmul.f32 0.001953125, %v761_v53  ;;  %vm958_vm6 = vweird.f32 %v908_v11 }
 0x28a   :  { %v944_v0 = vmul.f32 %v1686_v10, %v943_v12  ;;  %v858_v34 = vpop.xlane.xlu1 %857 }
 0x28b   :  { %v885_v38 = vmul.f32 %v2291_v35, %v2291_v35  ;;  %v878_v7 = vmul.f32 0.001953125, %v858_v34  ;;  %v881_v53 = vmul.f32 %v2309_v9, %v2309_v9 }
 0x28c   :  { %v945_v48 = vmul.f32 0.5, %v944_v0 }
 0x28d   :  { %v893_v49 = vsub.f32 %v877_v45, %v885_v38 }
 0x28e   :  { %v946_v46 = vsub.f32 1.5, %v945_v48 }
 0x28f   :  { %v1688_v37 = vpop.eup %1687  ;;  %v901_v54 = vmax.f32 %v893_v49, 0.0 }
 0x290   :  { %v953_v58 = vmul.f32 %v1688_v37, %v908_v11  ;;  %v786_v30 = vpop.xlane.xlu2 %785  ;;  %v947_v43 = vmul.f32 %v1686_v10, %v946_v46  ;;  %vm959_vm5 = vweird.f32 %v1688_v37 }
 0x291   :  { %v2295_v56 = vadd.f32 1e-05, %v901_v54  ;;  %v2297_v62 = vmul.f32 0.001953125, %v786_v30  ;;  %vm960_vm7 = vmor %vm958_vm6, %vm959_vm5 }
 0x292   :  { %v954_v27 = vmul.f32 %v1688_v37, %v953_v58  ;;  %v863_v5 = vpop.xlane.xlu0 %862  ;;  %v791_v6 = vpop.xlane.xlu1 %790  ;;  %v951_v31 = vsel %vm950_vm4, %v1686_v10, %v947_v43  ;;  %v2314_v10 = vmul.f32 0.001953125, %v766_v4 }
 0x293   :  { %1689 = vrsqrt.f32 %v2295_v56  ;;  %v886_v2 = vmul.f32 %v2297_v62, %v2297_v62  ;;  %v2305_v12 = vmul.f32 0.001953125, %v791_v6  ;;  %v2307_v23 = vmul.f32 %v951_v31, %v739_v63  ;;  %v740_v63 = vld [vmem:[%s2569_s3 + $0x20] sm:$0xff] }
 0x294   :  { %v955_v8 = vmul.f32 0.5, %v954_v27  ;;  %v879_v38 = vmul.f32 0.001953125, %v863_v5  ;;  %v882_v6 = vmul.f32 %v2314_v10, %v2314_v10  ;;  %vm968_vm9 = vweird.f32 %v2295_v56 }
 0x295   :  { %v894_v0 = vsub.f32 %v878_v7, %v886_v2  ;;  %v887_v48 = vmul.f32 %v2305_v12, %v2305_v12  ;;  %1033 = vperm.xlu1 %1683, %v2307_v23  }
 0x296   :  { %v956_v45 = vsub.f32 1.5, %v955_v8 }
 0x297   :  { %v902_v34 = vmax.f32 %v894_v0, 0.0  ;;  %v895_v49 = vsub.f32 %v879_v38, %v887_v48 }
 0x298   :  { %v833_v46 = vpop.xlane.xlu2 %832  ;;  %v957_v54 = vmul.f32 %v1688_v37, %v956_v45 }
 0x299   :  { %v1690_v58 = vpop.eup %1689  ;;  %v2318_v30 = vadd.f32 1e-05, %v902_v34  ;;  %v873_v43 = vmul.f32 0.001953125, %v833_v46  ;;  %v903_v27 = vmax.f32 %v895_v49, 0.0 }
 0x29a   :  { %v963_v4 = vmul.f32 %v1690_v58, %v2295_v56  ;;  %v838_v5 = vpop.xlane.xlu0 %837  ;;  %v961_v11 = vsel %vm960_vm7, %v1688_v37, %v957_v54  ;;  %v756_v0 = vpop.xlane.xlu1 %755  ;;  %v748_v37 = vld [vmem:[%s2570_s4 + $0x20] sm:$0xff]  ;;  %vm969_vm8 = vweird.f32 %v1690_v58  ;;  %v749_v56 = vld [vmem:[%s2570_s4 + $0x28] sm:$0xff] }
 0x29b   :  { %1691 = vrsqrt.f32 %v2318_v30  ;;  %v889_v31 = vsub.f32 %v873_v43, %v881_v53  ;;  %v874_v7 = vmul.f32 0.001953125, %v838_v5  ;;  %v2327_v8 = vadd.f32 1e-05, %v903_v27  ;;  %v741_v5 = vld [vmem:[%s2569_s3 + $0x28] sm:$0xff]  ;;  %vm970_vm10 = vmor %vm968_vm9, %vm969_vm8 }
 0x29c   :  { %v964_v2 = vmul.f32 %v1690_v58, %v963_v4  ;;  %v996_v45 = vmul.f32 %v961_v11, %v740_v63  ;;  %v2335_v54 = vmul.f32 0.001953125, %v756_v0  ;;  %vm978_vm13 = vweird.f32 %v2318_v30 }
 0x29d   :  { %v897_v38 = vmax.f32 %v889_v31, 0.0  ;;  %v890_v48 = vsub.f32 %v874_v7, %v882_v6  ;;  %1693 = vrsqrt.f32 %v2327_v8  ;;  %vm988_vm15 = vweird.f32 %v2327_v8 }
 0x29e   :  { %v965_v34 = vmul.f32 0.5, %v964_v2  ;;  %1038 = vperm.xlu1 %1683, %v996_v45   ;;  %v1004_v53 = vmul.f32 %v996_v45, %v2287_v55  ;;  %v880_v55 = vmul.f32 %v2335_v54, %v2335_v54 }
 0x29f   :  { %v2333_v49 = vadd.f32 1e-05, %v897_v38  ;;  %v898_v46 = vmax.f32 %v890_v48, 0.0 }
 0x2a0   :  { %v966_v43 = vsub.f32 1.5, %v965_v34  ;;  %v1012_v27 = vsub.f32 %v748_v37, %v1004_v53 }
 0x2a1   :  { %v1692_v63 = vpop.eup %1691  ;;  %1695 = vrsqrt.f32 %v2333_v49  ;;  %v906_v4 = vadd.f32 1e-05, %v898_v46  ;;  %vm928_vm8 = vweird.f32 %v2333_v49 }
 0x2a2   :  { %v967_v11 = vmul.f32 %v1690_v58, %v966_v43  ;;  %v973_v6 = vmul.f32 %v1692_v63, %v2318_v30  ;;  %v828_v31 = vpop.xlane.xlu0 %827  ;;  %1110 = vperm.xlu2 %1684, %v1012_v27   ;;  %vm979_vm11 = vweird.f32 %v1692_v63 }
 0x2a3   :  { %1697 = vrsqrt.f32 %v906_v4  ;;  %v872_v7 = vmul.f32 0.001953125, %v828_v31  ;;  %v1694_v2 = vpop.eup %1693  ;;  %vm980_vm14 = vmor %vm978_vm13, %vm979_vm11  ;;  %vm938_vm3 = vweird.f32 %v906_v4  ;;  %vm1193_vm11 = vcmask 523264  }
 0x2a4   :  { %v971_v0 = vsel %vm970_vm10, %v1690_v58, %v967_v11  ;;  %v974_v45 = vmul.f32 %v1692_v63, %v973_v6  ;;  %v983_v48 = vmul.f32 %v1694_v2, %v2327_v8  ;;  %vm989_vm12 = vweird.f32 %v1694_v2  ;;  %v738_v8 = vld [vmem:[%s2569_s3 + $0x10] sm:$0xff] }
 0x2a5   :  { %v997_v38 = vmul.f32 %v971_v0, %v741_v5  ;;  %v888_v34 = vsub.f32 %v872_v7, %v880_v55  ;;  %vm990_vm1 = vmor %vm988_vm15, %vm989_vm12  ;;  %vm1279_vm12 = vcmask 1042434  }
 0x2a6   :  { %v975_v37 = vmul.f32 0.5, %v974_v45  ;;  %v984_v43 = vmul.f32 %v1694_v2, %v983_v48  ;;  %v743_v45 = vld [vmem:[%s2569_s3 + $0x38] sm:$0xff] }
 0x2a7   :  { %v2350_v46 = vpop.eup %1695  ;;  %v1005_v53 = vmul.f32 %v997_v38, %v2291_v35  ;;  %v896_v15 = vmax.f32 %v888_v34, 0.0  ;;  %1043 = vperm.xlu1 %1683, %v997_v38   ;;  %v742_v38 = vld [vmem:[%s2569_s3 + $0x30] sm:$0xff] }
 0x2a8   :  { %v976_v27 = vsub.f32 1.5, %v975_v37  ;;  %v985_v58 = vmul.f32 0.5, %v984_v43  ;;  %v923_v55 = vmul.f32 %v2350_v46, %v2333_v49  ;;  %vm929_vm6 = vweird.f32 %v2350_v46  ;;  %v746_v49 = vld [vmem:[%s2570_s4 + $0x10] sm:$0xff] }
 0x2a9   :  { %v1698_v31 = vpop.eup %1697  ;;  %v904_v11 = vadd.f32 1e-05, %v896_v15  ;;  %v1013_v5 = vsub.f32 %v749_v56, %v1005_v53  ;;  %vm930_vm10 = vmor %vm928_vm8, %vm929_vm6 }
 0x2aa   :  { %v977_v6 = vmul.f32 %v1692_v63, %v976_v27  ;;  %v933_v7 = vmul.f32 %v1698_v31, %v906_v4  ;;  %v986_v0 = vsub.f32 1.5, %v985_v58  ;;  %v924_v34 = vmul.f32 %v2350_v46, %v923_v55  ;;  %v747_v4 = vld [vmem:[%s2570_s4 + $0x18] sm:$0xff] }
 0x2ab   :  { %1699 = vrsqrt.f32 %v904_v11  ;;  %1115 = vperm.xlu2 %1684, %v1013_v5   ;;  %vm939_vm2 = vweird.f32 %v1698_v31  ;;  %vm918_vm7 = vweird.f32 %v904_v11 }
 0x2ac   :  { %v934_v35 = vmul.f32 %v1698_v31, %v933_v7  ;;  %v987_v15 = vmul.f32 %v1694_v2, %v986_v0  ;;  %v981_v48 = vsel %vm980_vm14, %v1692_v63, %v977_v6  ;;  %v925_v58 = vmul.f32 0.5, %v924_v34  ;;  %vm940_vm4 = vmor %vm938_vm3, %vm939_vm2 }
 0x2ad   :  { %v998_v27 = vmul.f32 %v981_v48, %v742_v38 }
 0x2ae   :  { %v935_v37 = vmul.f32 0.5, %v934_v35  ;;  %v991_v56 = vsel %vm990_vm1, %v1694_v2, %v987_v15  ;;  %v1003_v2 = vmul.f32 %v2307_v23, %v2283_v51  ;;  %v926_v35 = vsub.f32 1.5, %v925_v58  ;;  %v750_v15 = vld [vmem:[%s2570_s4 + $0x30] sm:$0xff]  ;;  %v751_v51 = vld [vmem:[%s2570_s4 + $0x38] sm:$0xff] }
 0x2af   :  { %v999_v30 = vmul.f32 %v991_v56, %v743_v45  ;;  %v1006_v55 = vmul.f32 %v998_v27, %v2297_v62 }
 0x2b0   :  { %v936_v53 = vsub.f32 1.5, %v935_v37  ;;  %v1011_v48 = vsub.f32 %v747_v4, %v1003_v2  ;;  %v927_v23 = vmul.f32 %v2350_v46, %v926_v35 }
 0x2b1   :  { %v1700_v43 = vpop.eup %1699  ;;  %1053 = vperm.xlu1 %1683, %v999_v30   ;;  %v1014_v34 = vsub.f32 %v750_v15, %v1006_v55 }
 0x2b2   :  { %v913_v5 = vmul.f32 %v1700_v43, %v904_v11  ;;  %v937_v7 = vmul.f32 %v1698_v31, %v936_v53  ;;  %vm919_vm5 = vweird.f32 %v1700_v43  ;;  %v931_v53 = vsel %vm930_vm10, %v2350_v46, %v927_v23 }
 0x2b3   :  { %1048 = vperm.xlu2 %1684, %v998_v27   ;;  %vm920_vm9 = vmor %vm918_vm7, %vm919_vm5 }
 0x2b4   :  { %v914_v63 = vmul.f32 %v1700_v43, %v913_v5  ;;  %v941_v6 = vsel %vm940_vm4, %v1698_v31, %v937_v7  ;;  %v1007_v31 = vmul.f32 %v999_v30, %v2305_v12  ;;  %v736_v12 = vld [vmem:[%s2569_s3] sm:$0xff]  ;;  %v737_v30 = vld [vmem:[%s2569_s3 + $0x8] sm:$0xff] }
 0x2b5   :  { %v994_v0 = vmul.f32 %v941_v6, %v738_v8  ;;  %v993_v11 = vmul.f32 %v931_v53, %v737_v30  ;;  %v745_v8 = vld [vmem:[%s2570_s4 + $0x8] sm:$0xff] }
 0x2b6   :  { %v915_v45 = vmul.f32 0.5, %v914_v63  ;;  %v1015_v37 = vsub.f32 %v751_v51, %v1007_v31 }
 0x2b7   :  { %1028 = vperm.xlu0 %1682, %v994_v0   ;;  %v1002_v58 = vmul.f32 %v994_v0, %v2314_v10  ;;  %v744_v10 = vld [vmem:[%s2570_s4] sm:$0xff] }
 0x2b8   :  { %v916_v38 = vsub.f32 1.5, %v915_v45 }
 0x2b9   :  { %1105 = vperm.xlu1 %1683, %v1011_v48   ;;  %v1010_v5 = vsub.f32 %v746_v49, %v1002_v58 }
 0x2ba   :  { %v917_v62 = vmul.f32 %v1700_v43, %v916_v38 }
 0x2bb   :  { %1120 = vperm.xlu2 %1684, %v1014_v34  }
 0x2bc   :  { %v921_v56 = vsel %vm920_vm9, %v1700_v43, %v917_v62  ;;  %v1001_v43 = vmul.f32 %v993_v11, %v2309_v9 }
 0x2bd   :  { %v992_v27 = vmul.f32 %v921_v56, %v736_v12 }
 0x2be   :  { %v1009_v46 = vsub.f32 %v745_v8, %v1001_v43 }
 0x2bf   :  { %1125 = vperm.xlu0 %1682, %v1015_v37   ;;  %v1000_v7 = vmul.f32 %v992_v27, %v2335_v54 }
 0x2c1   :  { %1018 = vperm.xlu1 %1683, %v992_v27   ;;  %v1008_v63 = vsub.f32 %v744_v10, %v1000_v7 }
 0x2c3   :  { %1023 = vperm.xlu2 %1684, %v993_v11  }
 0x2c7   :  { %1100 = vperm.xlu0 %1682, %v1010_v5  }
 0x2cb   :  { %1095 = vperm.xlu2 %1684, %v1009_v46  }
 0x2cf   :  { %1090 = vperm.xlu0 %1682, %v1008_v63  }
 0x2fc   :  { %v1111_v6 = vpop.permute.xlu2 %1110 }
 0x305   :  { %v1116_v55 = vpop.permute.xlu2 %1115 }
 0x307   :  { %v1034_v2 = vpop.permute.xlu1 %1033 }
 0x308   :  { %v1068_v34 = vmul.f32 %v1034_v2, %v2157_v42  ;;  %v1069_v62 = vmul.f32 %v1034_v2, %v2159_v44  ;;  %v2412_v23 = vmul.f32 %v1034_v2, %v2155_v41  ;;  %v2415_v37 = vmul.f32 %v1034_v2, %v2167_v29 }
 0x30d   :  { %v1049_v9 = vpop.permute.xlu2 %1048 }
 0x30e   :  { %v1080_v51 = vmul.f32 %v1049_v9, %v2215_v17 }
 0x310   :  { %v1039_v0 = vpop.permute.xlu1 %1038 }
 0x311   :  { %v1072_v38 = vmul.f32 %v1039_v0, %v2175_v52  ;;  %v1073_v54 = vmul.f32 %v1039_v0, %v2177_v40  ;;  %v1074_v48 = vmul.f32 %v1039_v0, %v2173_v28  ;;  %v1075_v31 = vmul.f32 %v1039_v0, %v2187_v36 }
 0x312   :  { %v1081_v52 = vmul.f32 %v1049_v9, %v2217_v32  ;;  %v1082_v40 = vmul.f32 %v1049_v9, %v2213_v16  ;;  %v1083_v28 = vmul.f32 %v1049_v9, %v2225_v21 }
 0x313   :  { %v2423_v42 = vadd.f32 %v1111_v6, %v1072_v38  ;;  %v2425_v17 = vadd.f32 %v1111_v6, %v1073_v54  ;;  %v2427_v44 = vadd.f32 %v1111_v6, %v1074_v48  ;;  %v2429_v41 = vadd.f32 %v1111_v6, %v1075_v31 }
 0x315   :  { %v1121_v35 = vpop.permute.xlu2 %1120 }
 0x316   :  { %v1152_v29 = vadd.f32 %v1121_v35, %v1080_v51  ;;  %v1153_v56 = vadd.f32 %v1121_v35, %v1081_v52  ;;  %v1154_v11 = vadd.f32 %v1121_v35, %v1082_v40  ;;  %v1155_v58 = vadd.f32 %v1121_v35, %v1083_v28 }
 0x318   :  { %v1184_v2 = vmax.f32 %v1152_v29, 0.0  ;;  %v1185_v0 = vmax.f32 %v1153_v56, 0.0  ;;  %v1186_v9 = vmax.f32 %v1154_v11, 0.0 }
 0x319   :  { %v1044_v4 = vpop.permute.xlu1 %1043 }
 0x31a   :  { %v1076_v36 = vmul.f32 %v1044_v4, %v2195_v60  ;;  %v1077_v32 = vmul.f32 %v1044_v4, %v2197_v61  ;;  %v1078_v16 = vmul.f32 %v1044_v4, %v2193_v59  ;;  %v1079_v5 = vmul.f32 %v1044_v4, %v2207_v1 }
 0x31b   :  { %v1187_v1 = vmax.f32 %v1155_v58, 0.0 }
 0x31c   :  { %v1148_v49 = vadd.f32 %v1116_v55, %v1076_v36  ;;  %v1149_v59 = vadd.f32 %v1116_v55, %v1077_v32  ;;  %v1150_v10 = vadd.f32 %v1116_v55, %v1078_v16  ;;  %v1151_v35 = vadd.f32 %v1116_v55, %v1079_v5 }
 0x31d   :  { %v2421_v12 = vpop.permute.xlu2 %1023 }
 0x31e   :  { %v1180_v4 = vmax.f32 %v1148_v49, 0.0  ;;  %v1061_v38 = vmul.f32 %v2421_v12, %v2135_v20  ;;  %v1181_v54 = vmax.f32 %v1149_v59, 0.0  ;;  %v1062_v55 = vmul.f32 %v2421_v12, %v2131_v18 }
 0x31f   :  { %v1182_v52 = vmax.f32 %v1150_v10, 0.0  ;;  %v1183_v36 = vmax.f32 %v1151_v35, 0.0 }
 0x323   :  { %v1054_v45 = vpop.permute.xlu1 %1053 }
 0x324   :  { %v1084_v21 = vmul.f32 %v1054_v45, %v2239_v50  ;;  %v1085_v60 = vmul.f32 %v1054_v45, %v2241_v39  ;;  %v1086_v30 = vmul.f32 %v1054_v45, %v2233_v47  ;;  %v1087_v53 = vmul.f32 %v1054_v45, %v2252_v57 }
 0x325   :  { %v1176_v50 = vmax.f32 %v2423_v42, 0.0  ;;  %v1177_v39 = vmax.f32 %v2425_v17, 0.0  ;;  %v1060_v45 = vmul.f32 %v2421_v12, %v2133_v19  ;;  %v1096_v51 = vpop.permute.xlu2 %1095  ;;  %v1178_v42 = vmax.f32 %v2427_v44, 0.0 }
 0x326   :  { %v1179_v17 = vmax.f32 %v2429_v41, 0.0 }
 0x327   :  { %v1132_v56 = vadd.f32 %v1096_v51, %v1060_v45 }
 0x329   :  { %v2402_v15 = vpop.permute.xlu0 %1028 }
 0x32a   :  { %v1064_v48 = vmul.f32 %v2402_v15, %v2145_v25  ;;  %v1065_v31 = vmul.f32 %v2402_v15, %v2147_v26  ;;  %v1066_v20 = vmul.f32 %v2402_v15, %v2143_v24  ;;  %v1067_v18 = vmul.f32 %v2402_v15, %v2151_v33 }
 0x32b   :  { %v1106_v7 = vpop.permute.xlu1 %1105  ;;  %v1063_v24 = vmul.f32 %v2421_v12, %v2139_v22  ;;  %v1133_v15 = vadd.f32 %v1096_v51, %v1061_v38 }
 0x32c   :  { %v1140_v19 = vadd.f32 %v1106_v7, %v1068_v34  ;;  %v1141_v40 = vadd.f32 %v1106_v7, %v1069_v62  ;;  %v1142_v25 = vadd.f32 %v1106_v7, %v2412_v23  ;;  %v1143_v26 = vadd.f32 %v1106_v7, %v2415_v37 }
 0x32e   :  { %v1172_v37 = vmax.f32 %v1140_v19, 0.0  ;;  %v1173_v33 = vmax.f32 %v1141_v40, 0.0  ;;  %v1174_v44 = vmax.f32 %v1142_v25, 0.0  ;;  %v1175_v16 = vmax.f32 %v1143_v26, 0.0 }
 0x32f   :  { %v15_v25 = vstv %s2572_s6 }
 0x330   :  { %16 = vst [vmem:[#allocation2] sm:$0x1] %v15_v25 }
 0x331   :  { %v1126_v27 = vpop.permute.xlu0 %1125 }
 0x332   :  { %v1156_v43 = vadd.f32 %v1126_v27, %v1084_v21  ;;  %v1157_v8 = vadd.f32 %v1126_v27, %v1085_v60  ;;  %v1158_v46 = vadd.f32 %v1126_v27, %v1086_v30  ;;  %v1159_v61 = vadd.f32 %v1126_v27, %v1087_v53 }
 0x333   :  { %v1019_v32 = vpop.permute.xlu1 %1018  ;;  %v1134_v21 = vadd.f32 %v1096_v51, %v1062_v55  ;;  %v1135_v60 = vadd.f32 %v1096_v51, %v1063_v24  ;;  %v1164_v53 = vmax.f32 %v1132_v56, 0.0  ;;  %v1165_v27 = vmax.f32 %v1133_v15, 0.0 }
 0x334   :  { %v1188_v47 = vmax.f32 %v1156_v43, 0.0  ;;  %v1189_v63 = vmax.f32 %v1157_v8, 0.0  ;;  %v1190_v57 = vmax.f32 %v1158_v46, 0.0  ;;  %v1191_v6 = vmax.f32 %v1159_v61, 0.0  ;;  %v2579_v46 = vld [vmem:[#allocation4_spill] sm:$0xff] }
 0x335   :  { %v1056_v11 = vmul.f32 %v1019_v32, %v2125_v14  ;;  %v1057_v58 = vmul.f32 %v1019_v32, %v2127_v3  ;;  %v1058_v49 = vmul.f32 %v1019_v32, %v2123_v13  ;;  %v1166_v43 = vmax.f32 %v1134_v21, 0.0  ;;  %v1192_v13 = vld [vmem:[%s2571_s5] sm:$0x7] }
 0x336   :  { %1205 = vmatpush.msrb.mxu0 %v1188_v47  ;;  %1225 = vmatpush.msrb.mxu1 %v1189_v63  ;;  %v1167_v8 = vmax.f32 %v1135_v60, 0.0  ;;  %v1059_v61 = vmul.f32 %v1019_v32, %v2579_v46 }
 0x337   :  { %1245 = vmatpush.msrb.mxu2 %v1190_v57  ;;  %1265 = vmatpush.msrb.mxu3 %v1191_v6 }
 0x338   :  { %1206 = vmatpush.msrb.mxu0 %v1184_v2  ;;  %1226 = vmatpush.msrb.mxu1 %v1185_v0 }
 0x339   :  { %1246 = vmatpush.msrb.mxu2 %v1186_v9  ;;  %1266 = vmatpush.msrb.mxu3 %v1187_v1  ;;  %v1101_v28 = vpop.permute.xlu0 %1100 }
 0x33a   :  { %1207 = vmatpush.msrb.mxu0 %v1180_v4  ;;  %1227 = vmatpush.msrb.mxu1 %v1181_v54  ;;  %v1136_v34 = vadd.f32 %v1101_v28, %v1064_v48  ;;  %v1137_v62 = vadd.f32 %v1101_v28, %v1065_v31  ;;  %v1138_v29 = vadd.f32 %v1101_v28, %v1066_v20 }
 0x33b   :  { %1247 = vmatpush.msrb.mxu2 %v1182_v52  ;;  %1267 = vmatpush.msrb.mxu3 %v1183_v36  ;;  %v1139_v23 = vadd.f32 %v1101_v28, %v1067_v18 }
 0x33c   :  { %1208 = vmatpush.msrb.mxu0 %v1176_v50  ;;  %1228 = vmatpush.msrb.mxu1 %v1177_v39  ;;  %v1168_v22 = vmax.f32 %v1136_v34, 0.0  ;;  %v1169_v12 = vmax.f32 %v1137_v62, 0.0  ;;  %v1170_v41 = vmax.f32 %v1138_v29, 0.0 }
 0x33d   :  { %1248 = vmatpush.msrb.mxu2 %v1178_v42  ;;  %1268 = vmatpush.msrb.mxu3 %v1179_v17  ;;  %v1171_v30 = vmax.f32 %v1139_v23, 0.0  ;;  %v17_v17 = vstv %s2573_s7 }
 0x33e   :  { %1209 = vmatpush.msrb.mxu0 %v1172_v37  ;;  %1229 = vmatpush.msrb.mxu1 %v1173_v33  ;;  %18 = vst [vmem:[#allocation3] sm:$0x1] %v17_v17 }
 0x33f   :  { %1249 = vmatpush.msrb.mxu2 %v1174_v44  ;;  %1269 = vmatpush.msrb.mxu3 %v1175_v16  ;;  %v1277_v16 = vld [vmem:[#allocation2] sm:$0x1] }
 0x340   :  { %1210 = vmatpush.msrb.mxu0 %v1168_v22  ;;  %1230 = vmatpush.msrb.mxu1 %v1169_v12 }
 0x341   :  { %1250 = vmatpush.msrb.mxu2 %v1170_v41  ;;  %1270 = vmatpush.msrb.mxu3 %v1171_v30  ;;  %v1091_v5 = vpop.permute.xlu0 %1090 }
 0x342   :  { %1211 = vmatpush.msrb.mxu0 %v1164_v53  ;;  %1231 = vmatpush.msrb.mxu1 %v1165_v27  ;;  %v1128_v7 = vadd.f32 %v1091_v5, %v1056_v11  ;;  %v1129_v59 = vadd.f32 %v1091_v5, %v1057_v58  ;;  %v1130_v10 = vadd.f32 %v1091_v5, %v1058_v49 }
 0x343   :  { %1251 = vmatpush.msrb.mxu2 %v1166_v43  ;;  %1271 = vmatpush.msrb.mxu3 %v1167_v8  ;;  %v1131_v50 = vadd.f32 %v1091_v5, %v1059_v61 }
 0x344   :  { %v1160_v14 = vmax.f32 %v1128_v7, 0.0  ;;  %v1161_v39 = vmax.f32 %v1129_v59, 0.0  ;;  %v1162_v3 = vmax.f32 %v1130_v10, 0.0 }
 0x345   :  { %v1163_v47 = vmax.f32 %v1131_v50, 0.0  ;;  %v1278_v30 = vld [vmem:[#allocation3] sm:$0x1] }
 0x346   :  { %1212 = vmatpush.msrb.mxu0 %v1160_v14  ;;  %1232 = vmatpush.msrb.mxu1 %v1161_v39 }
 0x347   :  { %1252 = vmatpush.msrb.mxu2 %v1162_v3  ;;  %1272 = vmatpush.msrb.mxu3 %v1163_v47 }
 0x348   :  { %1586 = vmatmul.msk.f32.vlgmr.msrb.gmra.mxu2 %vm1193_vm11, %v1192_v13  ;;  %1587 = vmatmul.msk.f32.vlgmr.msrb.gmra.mxu3 %vm1193_vm11, %v1192_v13 }
 0x349   :  { %1584 = vmatmul.msk.f32.vlgmr.msrb.gmra.mxu0 %vm1193_vm11, %v1192_v13  ;;  %1585 = vmatmul.msk.f32.vlgmr.msrb.gmra.mxu1 %vm1193_vm11, %v1192_v13 }
 0x3c6   :  { %v2467_v63 = vpop.f32.mrf.mxu0  ;;  %v2469_v57 = vpop.f32.mrf.mxu1 }
 0x3c7   :  { %v1280_v6 = vsel %vm1279_vm12, %v2467_v63, 0.0  ;;  %v1289_v2 = vmul.f32 %v2467_v63, %v2467_v63  ;;  %v1281_v0 = vsel %vm1279_vm12, %v2469_v57, 0.0  ;;  %v1290_v9 = vmul.f32 %v2469_v57, %v2469_v57 }
 0x3c8   :  { %v1282_v1 = vadd.f32 %v1281_v0, %v1280_v6 }
 0x3c9   :  { %v1293_v35 = vsel %vm1279_vm12, %v1289_v2, 0.0  ;;  %v1294_v4 = vsel %vm1279_vm12, %v1290_v9, 0.0 }
 0x3ca   :  { %v1295_v54 = vadd.f32 %v1294_v4, %v1293_v35 }
 0x3cb   :  { %v2481_v45 = vpop.f32.mrf.mxu2  ;;  %v2483_v38 = vpop.f32.mrf.mxu3 }
 0x3cc   :  { %v1283_v48 = vsel %vm1279_vm12, %v2481_v45, 0.0  ;;  %v1291_v31 = vmul.f32 %v2481_v45, %v2481_v45  ;;  %v1292_v55 = vmul.f32 %v2483_v38, %v2483_v38  ;;  %v1285_v51 = vsel %vm1279_vm12, %v2483_v38, 0.0 }
 0x3cd   :  { %v1284_v52 = vadd.f32 %v1283_v48, %v1282_v1 }
 0x3ce   :  { %v1296_v19 = vsel %vm1279_vm12, %v1291_v31, 0.0  ;;  %v1298_v40 = vsel %vm1279_vm12, %v1292_v55, 0.0 }
 0x3cf   :  { %v1286_v20 = vadd.f32 %v1285_v51, %v1284_v52  ;;  %v1297_v28 = vadd.f32 %v1296_v19, %v1295_v54 }
 0x3d1   :  { %1287 = vadd.xlane.f32.xlu1 %v1286_v20  ;;  %v1299_v36 = vadd.f32 %v1298_v40, %v1297_v28 }
 0x3d3   :  { %1300 = vadd.xlane.f32.xlu2 %v1299_v36 }
 0x444   :  { %v1288_v26 = vpop.xlane.xlu1 %1287 }
 0x445   :  { %v1302_v18 = vmul.f32 0.001953125, %v1288_v26 }
 0x446   :  { %v1301_v42 = vpop.xlane.xlu2 %1300 }
 0x447   :  { %v1304_v34 = vmul.f32 %v1302_v18, %v1302_v18  ;;  %v1303_v62 = vmul.f32 0.001953125, %v1301_v42 }
 0x449   :  { %v1305_v24 = vsub.f32 %v1303_v62, %v1304_v34 }
 0x44b   :  { %v1306_v29 = vmax.f32 %v1305_v24, 0.0 }
 0x44d   :  { %v1307_v23 = vadd.f32 1e-05, %v1306_v29 }
 0x44f   :  { %1701 = vrsqrt.f32 %v1307_v23  ;;  %vm1314_vm14 = vweird.f32 %v1307_v23 }
 0x455   :  { %v1702_v56 = vpop.eup %1701 }
 0x456   :  { %v1309_v37 = vmul.f32 %v1702_v56, %v1307_v23  ;;  %vm1315_vm13 = vweird.f32 %v1702_v56 }
 0x457   :  { %vm1316_vm15 = vmor %vm1314_vm14, %vm1315_vm13 }
 0x458   :  { %v1310_v33 = vmul.f32 %v1702_v56, %v1309_v37 }
 0x45a   :  { %v1311_v15 = vmul.f32 0.5, %v1310_v33 }
 0x45c   :  { %v1312_v32 = vsub.f32 1.5, %v1311_v15 }
 0x45e   :  { %v1313_v44 = vmul.f32 %v1702_v56, %v1312_v32 }
 0x460   :  { %v1317_v21 = vsel %vm1316_vm15, %v1702_v56, %v1313_v44 }
 0x461   :  { %v1319_v60 = vperm.slane %v1317_v21, 2 }
 0x463   :  { %v1321_v22 = vmul.f32 %v1319_v60, %v1277_v16 }
 0x465   :  { %1333 = vperm.xlu0 %1682, %v1321_v22   ;;  %v1323_v12 = vperm.slane %v1321_v22, 0 }
 0x467   :  { %v1325_v41 = vmul.f32 %v1323_v12, %v1302_v18 }
 0x469   :  { %1327 = vst [vmem:[#allocation1] sm:$0xff] %v1325_v41 }
 0x470   :  { %v1329_v53 = vld [vmem:[#allocation1 + $0x2] ss:$9 sm:$0xff] }
 0x471   :  { %v1331_v27 = vsub.f32 %v1278_v30, %v1329_v53 }
 0x473   :  { %1343 = vperm.xlu0 %1682, %v1331_v27  }
 0x4d7   :  { %v1334_v11 = vpop.permute.xlu0 %1333 }
 0x4d8   :  { %v1336_v58 = vperm.slane %v1334_v11, 0 }
 0x4da   :  { %v1337_v49 = vmul.f32 %v1336_v58, %v2467_v63  ;;  %v1338_v43 = vmul.f32 %v1336_v58, %v2469_v57  ;;  %v1339_v8 = vmul.f32 %v1336_v58, %v2481_v45  ;;  %v1340_v46 = vmul.f32 %v1336_v58, %v2483_v38 }
 0x4e5   :  { %v1344_v5 = vpop.permute.xlu0 %1343 }
 0x4e6   :  { %v1346_v61 = vperm.slane %v1344_v5, 0 }
 0x4e8   :  { %v2505_v7 = vadd.f32 %v1346_v61, %v1337_v49  ;;  %v2507_v59 = vadd.f32 %v1346_v61, %v1338_v43  ;;  %v2509_v10 = vadd.f32 %v1346_v61, %v1339_v8  ;;  %v2511_v50 = vadd.f32 %v1346_v61, %v1340_v46 }
 0x4ea   :  { %v1588_v14 = vmul.f32 -1.442695, %v2505_v7  ;;  %v1589_v39 = vmul.f32 -1.442695, %v2507_v59  ;;  %v1590_v3 = vmul.f32 -1.442695, %v2509_v10 }
 0x4eb   :  { %v1591_v47 = vmul.f32 -1.442695, %v2511_v50 }
 0x4ec   :  { %1703 = vpow2.f32 %v1588_v14 }
 0x4ed   :  { %1705 = vpow2.f32 %v1589_v39 }
 0x4ee   :  { %1707 = vpow2.f32 %v1590_v3 }
 0x4ef   :  { %1709 = vpow2.f32 %v1591_v47 }
 0x4f2   :  { %v1704_v13 = vpop.eup %1703 }
 0x4f3   :  { %v1706_v6 = vpop.eup %1705  ;;  %v1363_v2 = vadd.f32 1.0, %v1704_v13 }
 0x4f4   :  { %v1708_v0 = vpop.eup %1707  ;;  %v1364_v9 = vadd.f32 1.0, %v1706_v6 }
 0x4f5   :  { %v1710_v35 = vpop.eup %1709  ;;  %v1365_v1 = vadd.f32 1.0, %v1708_v0  ;;  %1711 = vrcp.f32 %v1363_v2  ;;  %v1376_v54 = vand.u32 2147483647, %v1363_v2  ;;  %v1378_v48 = vand.u32 2147483648, %v1363_v2 }
 0x4f6   :  { %v1366_v4 = vadd.f32 1.0, %v1710_v35  ;;  %1713 = vrcp.f32 %v1364_v9  ;;  %v1391_v55 = vand.u32 2147483647, %v1364_v9  ;;  %v1393_v19 = vand.u32 2147483648, %v1364_v9 }
 0x4f7   :  { %1715 = vrcp.f32 %v1365_v1  ;;  %vm1372_vm1 = vweird.f32 %v1363_v2  ;;  %vm2517_vm2 = vcmp.eq.f32.partialorder %v1376_v54, 8.507059e+37  ;;  %vm1387_vm3 = vweird.f32 %v1364_v9 }
 0x4f8   :  { %1717 = vrcp.f32 %v1366_v4  ;;  %v1379_v18 = vor.u32 1.1754944e-38, %v1378_v48  ;;  %vm1402_vm4 = vweird.f32 %v1365_v1  ;;  %vm2521_vm5 = vcmp.eq.f32.partialorder %v1391_v55, 8.507059e+37 }
 0x4f9   :  { %v1406_v24 = vand.u32 2147483647, %v1365_v1  ;;  %v1394_v23 = vor.u32 1.1754944e-38, %v1393_v19  ;;  %v1408_v37 = vand.u32 2147483648, %v1365_v1  ;;  %v1423_v44 = vand.u32 2147483648, %v1366_v4 }
 0x4fa   :  { %v1421_v60 = vand.u32 2147483647, %v1366_v4  ;;  %vm1417_vm13 = vweird.f32 %v1366_v4 }
 0x4fb   :  { %v1712_v31 = vpop.eup %1711  ;;  %vm1407_vm12 = vcmp.eq.f32.partialorder %v1406_v24, 8.507059e+37  ;;  %v1409_v53 = vor.u32 1.1754944e-38, %v1408_v37  ;;  %v1424_v49 = vor.u32 1.1754944e-38, %v1423_v44 }
 0x4fc   :  { %v1714_v51 = vpop.eup %1713  ;;  %v1368_v52 = vmul.f32 %v1712_v31, %v1363_v2  ;;  %vm1373_vm6 = vweird.f32 %v1712_v31 }
 0x4fd   :  { %v1716_v40 = vpop.eup %1715  ;;  %v1383_v20 = vmul.f32 %v1714_v51, %v1364_v9  ;;  %vm1388_vm7 = vweird.f32 %v1714_v51  ;;  %vm1374_vm9 = vmor %vm1372_vm1, %vm1373_vm6  ;;  %vm1422_vm1 = vcmp.eq.f32.partialorder %v1421_v60, 8.507059e+37 }
 0x4fe   :  { %v1718_v36 = vpop.eup %1717  ;;  %v1369_v25 = vsub.f32 1.0, %v1368_v52  ;;  %v1398_v26 = vmul.f32 %v1716_v40, %v1365_v1  ;;  %vm1403_vm8 = vweird.f32 %v1716_v40  ;;  %vm1389_vm11 = vmor %vm1387_vm3, %vm1388_vm7 }
 0x4ff   :  { %v1384_v42 = vsub.f32 1.0, %v1383_v20  ;;  %v1413_v34 = vmul.f32 %v1718_v36, %v1366_v4  ;;  %vm1418_vm10 = vweird.f32 %v1718_v36  ;;  %vm1404_vm14 = vmor %vm1402_vm4, %vm1403_vm8 }
 0x500   :  { %v1399_v17 = vsub.f32 1.0, %v1398_v26  ;;  %v1370_v29 = vmul.f32 %v1712_v31, %v1369_v25  ;;  %vm1419_vm15 = vmor %vm1417_vm13, %vm1418_vm10 }
 0x501   :  { %v1385_v56 = vmul.f32 %v1714_v51, %v1384_v42  ;;  %v1414_v33 = vsub.f32 1.0, %v1413_v34 }
 0x502   :  { %v1371_v15 = vadd.f32 %v1712_v31, %v1370_v29  ;;  %v1400_v32 = vmul.f32 %v1716_v40, %v1399_v17 }
 0x503   :  { %v1386_v16 = vadd.f32 %v1714_v51, %v1385_v56  ;;  %v1415_v21 = vmul.f32 %v1718_v36, %v1414_v33 }
 0x504   :  { %v1375_v22 = vsel %vm1374_vm9, %v1712_v31, %v1371_v15  ;;  %v1401_v12 = vadd.f32 %v1716_v40, %v1400_v32 }
 0x505   :  { %v1380_v41 = vsel %vm2517_vm2, %v1379_v18, %v1375_v22  ;;  %v1390_v30 = vsel %vm1389_vm11, %v1714_v51, %v1386_v16  ;;  %v1416_v27 = vadd.f32 %v1718_v36, %v1415_v21  ;;  %vm1461_vm2 = vcmask 1041408  }
 0x506   :  { %v1395_v11 = vsel %vm2521_vm5, %v1394_v23, %v1390_v30  ;;  %v1405_v58 = vsel %vm1404_vm14, %v1716_v40, %v1401_v12  ;;  %v1592_v5 = vadd.f32 -0.5, %v1380_v41 }
 0x507   :  { %v1410_v43 = vsel %vm1407_vm12, %v1409_v53, %v1405_v58  ;;  %v1420_v8 = vsel %vm1419_vm15, %v1718_v36, %v1416_v27  ;;  %v1593_v46 = vadd.f32 -0.5, %v1395_v11 }
 0x508   :  { %v1425_v61 = vsel %vm1422_vm1, %v1424_v49, %v1420_v8  ;;  %v1594_v14 = vadd.f32 -0.5, %v1410_v43  ;;  %v1431_v39 = vsub.f32 0.0, %v1592_v5 }
 0x509   :  { %v1595_v3 = vadd.f32 -0.5, %v1425_v61  ;;  %v1432_v47 = vsub.f32 0.0, %v1593_v46 }
 0x50a   :  { %v1433_v13 = vsub.f32 0.0, %v1594_v14  ;;  %v1435_v6 = vmul.f32 %v1592_v5, %v1431_v39  ;;  %v1459_v39 = vld [vmem:[%s2574_s8] sm:$0x3] }
 0x50b   :  { %v1434_v2 = vsub.f32 0.0, %v1595_v3  ;;  %v1436_v0 = vmul.f32 %v1593_v46, %v1432_v47 }
 0x50c   :  { %v1437_v9 = vmul.f32 %v1594_v14, %v1433_v13  ;;  %v1439_v35 = vmul.f32 1.442695, %v1435_v6  ;;  %v1460_v6 = vld [vmem:[%s2575_s9] sm:$0x3] }
 0x50d   :  { %v1438_v1 = vmul.f32 %v1595_v3, %v1434_v2  ;;  %v1441_v4 = vmul.f32 1.442695, %v1436_v0 }
 0x50e   :  { %1719 = vpow2.f32 %v1439_v35  ;;  %v1443_v54 = vmul.f32 1.442695, %v1437_v9 }
 0x50f   :  { %1721 = vpow2.f32 %v1441_v4  ;;  %v1445_v48 = vmul.f32 1.442695, %v1438_v1 }
 0x510   :  { %1723 = vpow2.f32 %v1443_v54 }
 0x511   :  { %1725 = vpow2.f32 %v1445_v48 }
 0x514   :  { %v1720_v31 = vpop.eup %1719 }
 0x515   :  { %v1722_v55 = vpop.eup %1721  ;;  %v1447_v51 = vadd.f32 0.22119921, %v1720_v31 }
 0x516   :  { %v1724_v52 = vpop.eup %1723  ;;  %v1448_v19 = vadd.f32 0.22119921, %v1722_v55 }
 0x517   :  { %v1726_v40 = vpop.eup %1725  ;;  %v1449_v20 = vadd.f32 0.22119921, %v1724_v52  ;;  %v1451_v28 = vperm.slane %v1447_v51, 2 }
 0x518   :  { %v1450_v36 = vadd.f32 0.22119921, %v1726_v40  ;;  %v1452_v25 = vperm.slane %v1448_v19, 2 }
 0x519   :  { %v1453_v26 = vperm.slane %v1449_v20, 2  ;;  %v1455_v18 = vmul.f32 %v1451_v28, %v2467_v63 }
 0x51a   :  { %v1454_v42 = vperm.slane %v1450_v36, 2  ;;  %v1456_v34 = vmul.f32 %v1452_v25, %v2469_v57 }
 0x51b   :  { %v1457_v62 = vmul.f32 %v1453_v26, %v2481_v45  ;;  %v1462_v24 = vsel %vm1461_vm2, %v1455_v18, 0.0  ;;  %v1471_v17 = vmul.f32 %v1455_v18, %v1455_v18 }
 0x51c   :  { %v1458_v29 = vmul.f32 %v1454_v42, %v2483_v38  ;;  %v1463_v23 = vsel %vm1461_vm2, %v1456_v34, 0.0  ;;  %v1472_v56 = vmul.f32 %v1456_v34, %v1456_v34 }
 0x51d   :  { %v1464_v37 = vadd.f32 %v1463_v23, %v1462_v24  ;;  %v1473_v33 = vmul.f32 %v1457_v62, %v1457_v62  ;;  %v1475_v15 = vsel %vm1461_vm2, %v1471_v17, 0.0  ;;  %v1465_v32 = vsel %vm1461_vm2, %v1457_v62, 0.0 }
 0x51e   :  { %v1474_v63 = vmul.f32 %v1458_v29, %v1458_v29  ;;  %v1476_v44 = vsel %vm1461_vm2, %v1472_v56, 0.0  ;;  %v1467_v45 = vsel %vm1461_vm2, %v1458_v29, 0.0 }
 0x51f   :  { %v1466_v57 = vadd.f32 %v1465_v32, %v1464_v37  ;;  %v1477_v16 = vadd.f32 %v1476_v44, %v1475_v15  ;;  %v1478_v21 = vsel %vm1461_vm2, %v1473_v33, 0.0 }
 0x520   :  { %v1480_v22 = vsel %vm1461_vm2, %v1474_v63, 0.0 }
 0x521   :  { %v1468_v60 = vadd.f32 %v1467_v45, %v1466_v57  ;;  %v1479_v38 = vadd.f32 %v1478_v21, %v1477_v16 }
 0x523   :  { %1469 = vadd.xlane.f32.xlu0 %v1468_v60  ;;  %v1481_v12 = vadd.f32 %v1480_v22, %v1479_v38 }
 0x525   :  { %1482 = vadd.xlane.f32.xlu1 %v1481_v12 }
 0x596   :  { %v1470_v41 = vpop.xlane.xlu0 %1469 }
 0x597   :  { %v1484_v30 = vmul.f32 0.001953125, %v1470_v41 }
 0x598   :  { %v1483_v53 = vpop.xlane.xlu1 %1482 }
 0x599   :  { %v1486_v27 = vmul.f32 %v1484_v30, %v1484_v30  ;;  %v1485_v11 = vmul.f32 0.001953125, %v1483_v53 }
 0x59b   :  { %v1487_v58 = vsub.f32 %v1485_v11, %v1486_v27 }
 0x59d   :  { %v1488_v49 = vmax.f32 %v1487_v58, 0.0 }
 0x59f   :  { %v1489_v5 = vadd.f32 1e-05, %v1488_v49 }
 0x5a1   :  { %1727 = vrsqrt.f32 %v1489_v5  ;;  %vm1496_vm4 = vweird.f32 %v1489_v5 }
 0x5a7   :  { %v1728_v43 = vpop.eup %1727 }
 0x5a8   :  { %v1491_v8 = vmul.f32 %v1728_v43, %v1489_v5  ;;  %vm1497_vm3 = vweird.f32 %v1728_v43 }
 0x5a9   :  { %vm1498_vm5 = vmor %vm1496_vm4, %vm1497_vm3 }
 0x5aa   :  { %v1492_v46 = vmul.f32 %v1728_v43, %v1491_v8 }
 0x5ac   :  { %v1493_v61 = vmul.f32 0.5, %v1492_v46 }
 0x5ae   :  { %v1494_v14 = vsub.f32 1.5, %v1493_v61 }
 0x5b0   :  { %v1495_v3 = vmul.f32 %v1728_v43, %v1494_v14 }
 0x5b2   :  { %v1499_v47 = vsel %vm1498_vm5, %v1728_v43, %v1495_v3 }
 0x5b3   :  { %v1500_v13 = vmul.f32 %v1499_v47, %v1459_v39 }
 0x5b5   :  { %1505 = vperm.xlu2 %1684, %v1500_v13   ;;  %v1501_v2 = vmul.f32 %v1500_v13, %v1484_v30 }
 0x5b7   :  { %v1502_v0 = vsub.f32 %v1460_v6, %v1501_v2 }
 0x5b9   :  { %1514 = vperm.xlu1 %1683, %v1502_v0  }
 0x60f   :  { %v1506_v9 = vpop.permute.xlu2 %1505 }
 0x610   :  { %v1508_v35 = vmul.f32 %v1506_v9, %v1455_v18  ;;  %v1509_v1 = vmul.f32 %v1506_v9, %v1456_v34  ;;  %v1510_v4 = vmul.f32 %v1506_v9, %v1457_v62  ;;  %v1511_v54 = vmul.f32 %v1506_v9, %v1458_v29 }
 0x62b   :  { %v1515_v48 = vpop.permute.xlu1 %1514 }
 0x62c   :  { %v1517_v31 = vadd.f32 %v1515_v48, %v1508_v35  ;;  %v1518_v55 = vadd.f32 %v1515_v48, %v1509_v1  ;;  %v1519_v51 = vadd.f32 %v1515_v48, %v1510_v4  ;;  %v1520_v52 = vadd.f32 %v1515_v48, %v1511_v54 }
 0x62e   :  { %v1522_v19 = vsel %vm1461_vm2, %v1518_v55, %v2507_v59  ;;  %v1524_v40 = vsel %vm1461_vm2, %v1520_v52, %v2511_v50  ;;  %v1521_v36 = vsel %vm1461_vm2, %v1517_v31, %v2505_v7  ;;  %v1523_v25 = vsel %vm1461_vm2, %v1519_v51, %v2509_v10 }
 0x62f   :  { %v1529_v20 = vrot.slane %v1522_v19, 4  ;;  %v1530_v28 = vrot.slane %v1524_v40, 4 }
 0x631   :  { %v1531_v26 = vsel %vm49_vm0, %v1521_v36, %v1529_v20  ;;  %v1532_v18 = vsel %vm49_vm0, %v1523_v25, %v1530_v28 }
 0x632   :  { %1535 = vst [vmem:[%s2576_s10] sm:$0x77] %v1531_v26 }
 0x633   :  { %1536 = vst [vmem:[%s2576_s10 + $0x8] sm:$0x77] %v1532_v18 }

</bundles_post_ra>
